<compile_context>
chip_gen: v5e
topology: v5e:2x2
jax: 0.10.0
libtpu: 0.0.40
codegen_flags: <defaults>
</compile_context>

<pallas_src>
import jax
import jax.numpy as jnp
from jax.experimental import pallas as pl
from jax.experimental.pallas import tpu as pltpu


LAYERS_LOGICAL = [2, 220, 220, 220, 1]   # original PINN_psi widths (nn = 220)
LAYERS_PADDED = [2, 256, 256, 256, 1]    # zero-padded, MXU/lane-friendly widths

# Largest batch tile we will pick.  (256, 2048) f32 activations are 2 MiB per
# live buffer; a handful of live copies plus the resident weights stay well
# inside v7x's 32 MiB scoped-VMEM default (and v5e/v6e's larger budgets).
MAX_TB = 2048


def _swish(h):
    # Swish(h) = h * sigmoid(h), sigmoid in tanh form: one EUP transcendental
    # per element, exact, and no exp(-h) overflow edge case.
    return h * (0.5 + 0.5 * jnp.tanh(0.5 * h))


def pinn_psi_kernel(x_ref,
                    w0_ref, b0_ref,
                    w1_ref, b1_ref,
                    w2_ref, b2_ref,
                    w3_ref, b3_ref,
                    out_ref):
    """Whole MLP forward for one batch tile.  Activations are (F, tb), batch on lanes."""
    x = x_ref[...].astype(jnp.float32)                 # (2, tb)

    # ---- Layer 0 (in = 2): VPU broadcast FMAs, not a degenerate K=2 MXU matmul ----
    w0 = w0_ref[...]                                   # (H, 2), f32
    h = (w0[:, 0:1] * x[0:1, :]
         + w0[:, 1:2] * x[1:2, :]
         + b0_ref[...])                                # (H, tb), f32
    h = _swish(h)

    # ---- Hidden layers: MXU matmuls (bf16 operands on v6e/v7x), f32 accumulation ----
    # h stays f32 between layers; the cast to the weight dtype happens only at
    # the MXU boundary, keeping all VPU/EUP work in f32 (also right for v5e).
    h = jnp.dot(w1_ref[...], h.astype(w1_ref.dtype),
                preferred_element_type=jnp.float32) + b1_ref[...]
    h = _swish(h)
    h = jnp.dot(w2_ref[...], h.astype(w2_ref.dtype),
                preferred_element_type=jnp.float32) + b2_ref[...]
    h = _swish(h)

    # ---- Final layer (out = 1): broadcast-mul + sublane reduction (XLU slot) ----
    y = jnp.sum(h * w3_ref[...], axis=0, keepdims=True) + b3_ref[...]   # (1, tb)
    out_ref[...] = y.astype(out_ref.dtype)             # lane-dense -> unmasked stores


def pick_batch_tile(n, max_tb=MAX_TB):
    """Largest lane-aligned divisor of n, capped at max_tb, preferring a grid
    of >= 4 steps (and >= 2 so both v7x TensorCores get work)."""
    candidates = [tb for tb in range(128, min(n, max_tb) + 1, 128) if n % tb == 0]
    if not candidates:
        raise ValueError("batch size must be a multiple of 128")
    for min_grid in (4, 2, 1):
        ok = [tb for tb in candidates if n // tb >= min_grid]
        if ok:
            return max(ok)
    return candidates[0]


def pinn_psi_forward_T(xT, params, *, tb=None, compute_dtype=jnp.float32):
    """Lane-major forward: xT is (2, N) f32, returns (1, N) f32.

    This is the zero-copy entry point: keep collocation points stored as
    (2, N) / (1, N) in the training loop to avoid a per-call HBM transpose.
    """
    d_in, n = xT.shape
    assert d_in == LAYERS_PADDED[0]
    if tb is None:
        tb = pick_batch_tile(n)
    assert n % tb == 0 and tb % 128 == 0, "batch tile must be lane-aligned and divide N"
    d_out = LAYERS_PADDED[-1]

    (w0, b0), (w1, b1), (w2, b2), (w3, b3) = params

    # Layer-0 / final-layer weights stay f32 (they feed VPU / XLU work);
    # only the two 256x256 hidden weights take the (optional) bf16 MXU dtype.
    flat_params = [
        w0.astype(jnp.float32), b0.astype(jnp.float32),
        w1.astype(compute_dtype), b1.astype(jnp.float32),
        w2.astype(compute_dtype), b2.astype(jnp.float32),
        w3.T.astype(jnp.float32), b3.astype(jnp.float32),   # (H, 1) for broadcast+reduce
    ]

    # Constant index_map => weight/bias blocks are resident across grid steps
    # (no re-fetch).  Total param VMEM is <1 MiB, so default buffering is fine.
    param_specs = [pl.BlockSpec(p.shape, lambda i: (0, 0)) for p in flat_params]

    x_spec = pl.BlockSpec((d_in, tb), lambda i: (0, i))
    out_spec = pl.BlockSpec((d_out, tb), lambda i: (0, i))

    yT = pl.pallas_call(
        pinn_psi_kernel,
        out_shape=jax.ShapeDtypeStruct((d_out, n), jnp.float32),
        grid_spec=pltpu.PrefetchScalarGridSpec(
            num_scalar_prefetch=0,
            grid=(n // tb,),
            in_specs=[x_spec] + param_specs,
            out_specs=out_spec,
        ),
        compiler_params=pltpu.CompilerParams(
            dimension_semantics=("parallel",)),
    )(xT, *flat_params)
    return yT


def pinn_psi_forward(x, params, *, tb=None, compute_dtype=jnp.float32):
    """Convenience wrapper in the PyTorch (N, 2) -> (N, 1) orientation.

    Pays one HBM transpose pass each way; for large-N training loops keep the
    lane-major layout and call pinn_psi_forward_T directly.
    """
    return pinn_psi_forward_T(x.T, params, tb=tb, compute_dtype=compute_dtype).T


def init_params(key):
    """Xavier-uniform at the logical 220-wide shapes, zero-padded to 256.

    Padded rows/cols are zero and Swish(0) = 0, so the padded network computes
    exactly the same function as the original 220-wide PINN_psi.
    """
    params = []
    for i in range(len(LAYERS_LOGICAL) - 1):
        fi, fo = LAYERS_LOGICAL[i], LAYERS_LOGICAL[i + 1]
        pi, po = LAYERS_PADDED[i], LAYERS_PADDED[i + 1]
        key, sub = jax.random.split(key)
        limit = jnp.sqrt(6.0 / (fi + fo)).astype(jnp.float32)
        w_log = jax.random.uniform(sub, (fo, fi), jnp.float32,
                                   minval=-limit, maxval=limit)
        w = jnp.zeros((po, pi), jnp.float32).at[:fo, :fi].set(w_log)
        b = jnp.zeros((po, 1), jnp.float32)
        params.append((w, b))
    return params


def reference_forward(x, params):
    """Pure-JAX reference in the standard (N, F) orientation (highest precision)."""
    h = x
    for (w, b) in params[:-1]:
        h = jnp.dot(h, w.T, precision=jax.lax.Precision.HIGHEST) + b[:, 0]
        h = h * jax.nn.sigmoid(h)
    w, b = params[-1]
    return jnp.dot(h, w.T, precision=jax.lax.Precision.HIGHEST) + b[:, 0]


if __name__ == "__main__":
    key = jax.random.PRNGKey(0)
    k_x, k_p = jax.random.split(key)

    N = 512                           # small demo batch; pick_batch_tile -> tb=128, grid=4
    x = jax.random.normal(k_x, (N, LAYERS_PADDED[0]), jnp.float32)
    params = init_params(k_p)

    ref = reference_forward(x, params)

    # ---- f32 path (exact sigmoid via tanh -> tight tolerance) ----
    out_f32 = pinn_psi_forward(x, params)
    out_f32 = jax.block_until_ready(out_f32)
    assert out_f32.shape == (N, LAYERS_PADDED[-1])
    err_f32 = float(jnp.max(jnp.abs(out_f32 - ref)))
    assert jnp.allclose(out_f32, ref, atol=5e-4, rtol=5e-4), (
        f"f32 mismatch vs JAX reference, max abs err = {err_f32}")

    # ---- bf16 MXU path (hidden matmuls only, f32 accumulation / element-wise) ----
    out_bf16 = pinn_psi_forward(x, params, compute_dtype=jnp.bfloat16)
    out_bf16 = jax.block_until_ready(out_bf16)
    err_bf16 = float(jnp.max(jnp.abs(out_bf16 - ref)))
    assert jnp.allclose(out_bf16, ref, atol=2e-2, rtol=2e-2), (
        f"bf16 mismatch vs JAX reference, max abs err = {err_bf16}")

    # ---- lane-major entry point (no host transposes) ----
    outT = pinn_psi_forward_T(x.T, params)
    outT = jax.block_until_ready(outT)
    assert outT.shape == (LAYERS_PADDED[-1], N)
    assert jnp.allclose(outT.T, out_f32, atol=1e-6, rtol=1e-6)

    print("KERNEL_OK")
</pallas_src>

<mosaic_0001>
module attributes {stable_mosaic.version = 11 : i64} {
  func.func @pinn_psi_kernel(%arg0: i32, %arg1: memref<2x128xf32, #tpu.memory_space<vmem>>, %arg2: memref<256x2xf32, #tpu.memory_space<vmem>>, %arg3: memref<256x1xf32, #tpu.memory_space<vmem>>, %arg4: memref<256x256xf32, #tpu.memory_space<vmem>>, %arg5: memref<256x1xf32, #tpu.memory_space<vmem>>, %arg6: memref<256x256xf32, #tpu.memory_space<vmem>>, %arg7: memref<256x1xf32, #tpu.memory_space<vmem>>, %arg8: memref<256x1xf32, #tpu.memory_space<vmem>>, %arg9: memref<1x1xf32, #tpu.memory_space<vmem>>, %arg10: memref<1x128xf32, #tpu.memory_space<vmem>>) attributes {dimension_semantics = [#tpu.dimension_semantics<parallel>], iteration_bounds = array<i64: 4>, scalar_prefetch = 0 : i64, scratch_operands = 0 : i64, tpu.core_type = #tpu.core_type<tc>, window_params = [{transform_indices = @transform_0, window_bounds = array<i64: 2, 128>}, {pipeline_mode = #tpu.pipeline_mode<synchronous>, transform_indices = @transform_1, window_bounds = array<i64: 256, 2>}, {pipeline_mode = #tpu.pipeline_mode<synchronous>, transform_indices = @transform_2, window_bounds = array<i64: 256, 1>}, {pipeline_mode = #tpu.pipeline_mode<synchronous>, transform_indices = @transform_3, window_bounds = array<i64: 256, 256>}, {pipeline_mode = #tpu.pipeline_mode<synchronous>, transform_indices = @transform_4, window_bounds = array<i64: 256, 1>}, {pipeline_mode = #tpu.pipeline_mode<synchronous>, transform_indices = @transform_5, window_bounds = array<i64: 256, 256>}, {pipeline_mode = #tpu.pipeline_mode<synchronous>, transform_indices = @transform_6, window_bounds = array<i64: 256, 1>}, {pipeline_mode = #tpu.pipeline_mode<synchronous>, transform_indices = @transform_7, window_bounds = array<i64: 256, 1>}, {pipeline_mode = #tpu.pipeline_mode<synchronous>, transform_indices = @transform_8, window_bounds = array<i64: 1, 1>}, {transform_indices = @transform_9, window_bounds = array<i64: 1, 128>}]} {
    %c0 = arith.constant 0 : index
    %c0_0 = arith.constant 0 : index
    %0 = vector.load %arg1[%c0, %c0_0] : memref<2x128xf32, #tpu.memory_space<vmem>>, vector<2x128xf32>
    %c0_1 = arith.constant 0 : index
    %c0_2 = arith.constant 0 : index
    %1 = vector.load %arg2[%c0_1, %c0_2] : memref<256x2xf32, #tpu.memory_space<vmem>>, vector<256x2xf32>
    %2 = vector.extract_strided_slice %1 {offsets = [0, 0], sizes = [256, 1], strides = [1, 1]} : vector<256x2xf32> to vector<256x1xf32>
    %3 = vector.extract_strided_slice %0 {offsets = [0, 0], sizes = [1, 128], strides = [1, 1]} : vector<2x128xf32> to vector<1x128xf32>
    %4 = vector.broadcast %2 : vector<256x1xf32> to vector<256x128xf32>
    %5 = vector.broadcast %3 : vector<1x128xf32> to vector<256x128xf32>
    %6 = arith.mulf %4, %5 : vector<256x128xf32>
    %7 = vector.extract_strided_slice %1 {offsets = [0, 1], sizes = [256, 1], strides = [1, 1]} : vector<256x2xf32> to vector<256x1xf32>
    %8 = vector.extract_strided_slice %0 {offsets = [1, 0], sizes = [1, 128], strides = [1, 1]} : vector<2x128xf32> to vector<1x128xf32>
    %9 = vector.broadcast %7 : vector<256x1xf32> to vector<256x128xf32>
    %10 = vector.broadcast %8 : vector<1x128xf32> to vector<256x128xf32>
    %11 = arith.mulf %9, %10 : vector<256x128xf32>
    %12 = arith.addf %6, %11 : vector<256x128xf32>
    %c0_3 = arith.constant 0 : index
    %c0_4 = arith.constant 0 : index
    %13 = vector.load %arg3[%c0_3, %c0_4] : memref<256x1xf32, #tpu.memory_space<vmem>>, vector<256x1xf32>
    %14 = vector.broadcast %13 : vector<256x1xf32> to vector<256x128xf32>
    %15 = arith.addf %12, %14 : vector<256x128xf32>
    %cst = arith.constant 5.000000e-01 : f32
    %16 = vector.broadcast %cst : f32 to vector<256x128xf32>
    %17 = arith.mulf %16, %15 : vector<256x128xf32>
    %18 = math.tanh %17 : vector<256x128xf32>
    %cst_5 = arith.constant 5.000000e-01 : f32
    %19 = vector.broadcast %cst_5 : f32 to vector<256x128xf32>
    %20 = arith.mulf %19, %18 : vector<256x128xf32>
    %cst_6 = arith.constant 5.000000e-01 : f32
    %21 = vector.broadcast %cst_6 : f32 to vector<256x128xf32>
    %22 = arith.addf %21, %20 : vector<256x128xf32>
    %23 = arith.mulf %15, %22 : vector<256x128xf32>
    %c0_7 = arith.constant 0 : index
    %c0_8 = arith.constant 0 : index
    %24 = vector.load %arg4[%c0_7, %c0_8] : memref<256x256xf32, #tpu.memory_space<vmem>>, vector<256x256xf32>
    %cst_9 = arith.constant dense<0.000000e+00> : vector<256x128xf32>
    %25 = tpu.matmul %24, %23, %cst_9 {dimension_numbers = #tpu.dot_dimension_numbers<[1], [0], [0], [1], [0, 0, 1, 1], [], []>} : vector<256x256xf32>, vector<256x128xf32>, vector<256x128xf32> -> vector<256x128xf32>
    %c0_10 = arith.constant 0 : index
    %c0_11 = arith.constant 0 : index
    %26 = vector.load %arg5[%c0_10, %c0_11] : memref<256x1xf32, #tpu.memory_space<vmem>>, vector<256x1xf32>
    %27 = vector.broadcast %26 : vector<256x1xf32> to vector<256x128xf32>
    %28 = arith.addf %25, %27 : vector<256x128xf32>
    %cst_12 = arith.constant 5.000000e-01 : f32
    %29 = vector.broadcast %cst_12 : f32 to vector<256x128xf32>
    %30 = arith.mulf %29, %28 : vector<256x128xf32>
    %31 = math.tanh %30 : vector<256x128xf32>
    %cst_13 = arith.constant 5.000000e-01 : f32
    %32 = vector.broadcast %cst_13 : f32 to vector<256x128xf32>
    %33 = arith.mulf %32, %31 : vector<256x128xf32>
    %cst_14 = arith.constant 5.000000e-01 : f32
    %34 = vector.broadcast %cst_14 : f32 to vector<256x128xf32>
    %35 = arith.addf %34, %33 : vector<256x128xf32>
    %36 = arith.mulf %28, %35 : vector<256x128xf32>
    %c0_15 = arith.constant 0 : index
    %c0_16 = arith.constant 0 : index
    %37 = vector.load %arg6[%c0_15, %c0_16] : memref<256x256xf32, #tpu.memory_space<vmem>>, vector<256x256xf32>
    %cst_17 = arith.constant dense<0.000000e+00> : vector<256x128xf32>
    %38 = tpu.matmul %37, %36, %cst_17 {dimension_numbers = #tpu.dot_dimension_numbers<[1], [0], [0], [1], [0, 0, 1, 1], [], []>} : vector<256x256xf32>, vector<256x128xf32>, vector<256x128xf32> -> vector<256x128xf32>
    %c0_18 = arith.constant 0 : index
    %c0_19 = arith.constant 0 : index
    %39 = vector.load %arg7[%c0_18, %c0_19] : memref<256x1xf32, #tpu.memory_space<vmem>>, vector<256x1xf32>
    %40 = vector.broadcast %39 : vector<256x1xf32> to vector<256x128xf32>
    %41 = arith.addf %38, %40 : vector<256x128xf32>
    %cst_20 = arith.constant 5.000000e-01 : f32
    %42 = vector.broadcast %cst_20 : f32 to vector<256x128xf32>
    %43 = arith.mulf %42, %41 : vector<256x128xf32>
    %44 = math.tanh %43 : vector<256x128xf32>
    %cst_21 = arith.constant 5.000000e-01 : f32
    %45 = vector.broadcast %cst_21 : f32 to vector<256x128xf32>
    %46 = arith.mulf %45, %44 : vector<256x128xf32>
    %cst_22 = arith.constant 5.000000e-01 : f32
    %47 = vector.broadcast %cst_22 : f32 to vector<256x128xf32>
    %48 = arith.addf %47, %46 : vector<256x128xf32>
    %49 = arith.mulf %41, %48 : vector<256x128xf32>
    %c0_23 = arith.constant 0 : index
    %c0_24 = arith.constant 0 : index
    %50 = vector.load %arg8[%c0_23, %c0_24] : memref<256x1xf32, #tpu.memory_space<vmem>>, vector<256x1xf32>
    %51 = vector.broadcast %50 : vector<256x1xf32> to vector<256x128xf32>
    %52 = arith.mulf %49, %51 : vector<256x128xf32>
    %cst_25 = arith.constant dense<0.000000e+00> : vector<128xf32>
    %53 = vector.multi_reduction <add>, %52, %cst_25 [0] : vector<256x128xf32> to vector<128xf32>
    %54 = vector.shape_cast %53 : vector<128xf32> to vector<1x128xf32>
    %c0_26 = arith.constant 0 : index
    %c0_27 = arith.constant 0 : index
    %55 = vector.load %arg9[%c0_26, %c0_27] : memref<1x1xf32, #tpu.memory_space<vmem>>, vector<1x1xf32>
    %56 = vector.broadcast %55 : vector<1x1xf32> to vector<1x128xf32>
    %57 = arith.addf %54, %56 : vector<1x128xf32>
    %c0_28 = arith.constant 0 : index
    %c0_29 = arith.constant 0 : index
    %58 = vector.load %arg10[%c0_28, %c0_29] : memref<1x128xf32, #tpu.memory_space<vmem>>, vector<1x128xf32>
    tpu.vector_store %arg10[%c0_28, %c0_29], %57 {strides = array<i32>} : memref<1x128xf32, #tpu.memory_space<vmem>>, vector<1x128xf32>,
    return
  }
  func.func @transform_0(%arg0: i32) -> (i32, i32) {
    %c0_i32 = arith.constant 0 : i32
    %c0_i32_0 = arith.constant 0 : i32
    return %c0_i32, %arg0 : i32, i32
  }
  func.func @transform_1(%arg0: i32) -> (i32, i32) {
    %c0_i32 = arith.constant 0 : i32
    %c0_i32_0 = arith.constant 0 : i32
    %c0_i32_1 = arith.constant 0 : i32
    return %c0_i32, %c0_i32_0 : i32, i32
  }
  func.func @transform_2(%arg0: i32) -> (i32, i32) {
    %c0_i32 = arith.constant 0 : i32
    %c0_i32_0 = arith.constant 0 : i32
    %c0_i32_1 = arith.constant 0 : i32
    return %c0_i32, %c0_i32_0 : i32, i32
  }
  func.func @transform_3(%arg0: i32) -> (i32, i32) {
    %c0_i32 = arith.constant 0 : i32
    %c0_i32_0 = arith.constant 0 : i32
    %c0_i32_1 = arith.constant 0 : i32
    return %c0_i32, %c0_i32_0 : i32, i32
  }
  func.func @transform_4(%arg0: i32) -> (i32, i32) {
    %c0_i32 = arith.constant 0 : i32
    %c0_i32_0 = arith.constant 0 : i32
    %c0_i32_1 = arith.constant 0 : i32
    return %c0_i32, %c0_i32_0 : i32, i32
  }
  func.func @transform_5(%arg0: i32) -> (i32, i32) {
    %c0_i32 = arith.constant 0 : i32
    %c0_i32_0 = arith.constant 0 : i32
    %c0_i32_1 = arith.constant 0 : i32
    return %c0_i32, %c0_i32_0 : i32, i32
  }
  func.func @transform_6(%arg0: i32) -> (i32, i32) {
    %c0_i32 = arith.constant 0 : i32
    %c0_i32_0 = arith.constant 0 : i32
    %c0_i32_1 = arith.constant 0 : i32
    return %c0_i32, %c0_i32_0 : i32, i32
  }
  func.func @transform_7(%arg0: i32) -> (i32, i32) {
    %c0_i32 = arith.constant 0 : i32
    %c0_i32_0 = arith.constant 0 : i32
    %c0_i32_1 = arith.constant 0 : i32
    return %c0_i32, %c0_i32_0 : i32, i32
  }
  func.func @transform_8(%arg0: i32) -> (i32, i32) {
    %c0_i32 = arith.constant 0 : i32
    %c0_i32_0 = arith.constant 0 : i32
    %c0_i32_1 = arith.constant 0 : i32
    return %c0_i32, %c0_i32_0 : i32, i32
  }
  func.func @transform_9(%arg0: i32) -> (i32, i32) {
    %c0_i32 = arith.constant 0 : i32
    %c0_i32_0 = arith.constant 0 : i32
    return %c0_i32, %arg0 : i32, i32
  }
}

</mosaic_0001>

<bundles_post_ra>
// kernel: tpu_custom_call.1
= control target key start
LH: loop header
LB: loop body
LE: loop exit
PB: predicated region body
PF: predicated region fallthrough
CT: control target
= control target key end

     0   :  { %s4873_s0 = inlined_call_operand.vmem [shape: f32[2,512], index: 0, kind: input, shape index: {}]   ;;  %s4874_s1 = inlined_call_operand.vmem [shape: f32[256,2], index: 1, kind: input, shape index: {}]   ;;  %s4875_s2 = inlined_call_operand.vmem [shape: f32[256,1], index: 2, kind: input, shape index: {}]   ;;  %s4876_s3 = inlined_call_operand.vmem [shape: f32[256,256], index: 3, kind: input, shape index: {}]   ;;  %s4877_s4 = inlined_call_operand.vmem [shape: f32[256,1], index: 4, kind: input, shape index: {}]   ;;  %s4878_s5 = inlined_call_operand.vmem [shape: f32[256,256], index: 5, kind: input, shape index: {}]   ;;  %s4879_s6 = inlined_call_operand.vmem [shape: f32[256,1], index: 6, kind: input, shape index: {}]   ;;  %s4880_s7 = inlined_call_operand.vmem [shape: f32[256,1], index: 7, kind: input, shape index: {}]   ;;  %s4881_s8 = inlined_call_operand.<no memory space> [shape: f32[1,1], index: 8, kind: input, shape index: {}]   ;;  %s4882_s9 = inlined_call_operand.hbm [shape: f32[1,512], index: 9, kind: output, shape index: {}]  }
   0x1   :  { %v14_v0 = vstv %s4881_s8 }
   0x2   :  { %15 = vst [vmem:[#allocation2] sm:$0x1] %v14_v0 }
   0x3   :  { %16 = vsyncpa [#allocation4], 0 }
   0x4   :  { %18 = vsyncpa [#allocation4 + $0x1], 0  ;;  %s3139_s11 = smov 0   ;;  %s3141_s12 = smov 0  }
   0x5   :  { %s3143_s13 = smov 0   ;;  %s3145_s14 = smov 0  }
   0x6 LB: > { %s3160_s8 = sadd.s32 4294967295, %s3082_s14   ;;  %s2754_s15 = sadd.s32 4294967294, %s3082_s14   ;;  %s3082_s14 = sphi %s3145_s14, %s4901_s14   ;;  %s3078_s13 = sphi %s3143_s13, %s4900_s13   ;;  %s3074_s12 = sphi %s3141_s12, %s4899_s12   ;;  %s3070_s11 = sphi %s3139_s11, %s4898_s11  }
   0x7   : > { %s3164_s16 = sadd.s32 1, %s3082_s14   ;;  %s225_s17 = sadd.s32 1, %s3078_s13 }
   0x8   : > { %s222_s18 = ssub.s32 %s3082_s14, %s3164_s16  ;;  %p235_p0 = scmp.ne.s32.totalorder %s3078_s13, %s3074_s12 }
   0x9   : > { %p223_p1 = scmp.eq.s32.totalorder %s222_s18, 0  ;;  %p236_p2 = scmp.eq.s32.totalorder %s3160_s8, 3 }
   0xa   : > { %p241_p3 = scmp.ne.s32.totalorder %s3074_s12, %s3070_s11  ;;  %p242_p4 = scmp.eq.s32.totalorder %s2754_s15, 3 }
   0xb   : > { %s3175_s19 = scalar_select %p223_p1, %s3078_s13, %s225_s17  }
   0xc   : > { %p3177_p5 = por %p236_p2, %p235_p0  ;;  %p3181_p6 = por %p242_p4, %p241_p3 }
   0xd   : > { %p2757_p7 = scmp.ge.s32.totalorder %s3082_s14, 1  ;;  %p291_p8 = scmp.lt.s32.totalorder %s3082_s14, 5 }
   0xf   : > { %p292_p9 = pnand %p2757_p7, %p291_p8 }
  0x11   : > { %295 = sbr.rel (%p292_p9) target bundleno = 1280 (0x500), region = 56 }
  0x16   : > { %v3190_v1 = vld [vmem:[%s4874_s1 + $0x20] sm:$0xff]  ;;  %v3195_v2 = vld [vmem:[%s4874_s1 + $0x10] sm:$0xff]  ;;  %v331_v3 = vld [vmem:[%s4874_s1 + $0x8] sm:$0xff]  ;;  %v4885_v4 = vmov 1   ;;  %v4883_v5 = vmov 0   ;;  %p325_p10 = scmp.lt.s32.totalorder %s3160_s8, 3  ;;  %s2695_s18 = scalar_lea.hbm %s4882_s9, %s3160_s8 }
  0x17   : > { %2805 = vset.pattern.permute.xlu0 %v4885_v4  ;;  %2803 = vset.pattern.permute.xlu2 %v4883_v5  ;;  %v335_v6 = vld [vmem:[%s4874_s1 + $0x28] sm:$0xff]  ;;  %v333_v7 = vld [vmem:[%s4874_s1 + $0x18] sm:$0xff]  ;;  %v338_v9 = vld [vmem:[%s4874_s1 + $0x40] sm:$0xff]  ;;  %s2699_s24 = sshll.u32 %s2695_s18, 4  ;;  %s3040_s29 = scalar_lea.hbm %s4882_s9, 4  ;;  %s2700_s24 = int_to_ptr.hbm [resolvable:$true] %s2699_s24 }
  0x18   : > { %2802 = vset.pattern.permute.xlu1 %v4883_v5  ;;  %384 = vperm.xlu2 %2803, %v3190_v1   ;;  %v3214_v8 = vld [vmem:[%s4874_s1 + $0x78] sm:$0xff]  ;;  %v343_v11 = vld [vmem:[%s4874_s1 + $0x68] sm:$0xff]  ;;  %v340_v13 = vld [vmem:[%s4874_s1 + $0x50] sm:$0xff]  ;;  %s326_s10 = scalar_select %p325_p10, %s3160_s8, 3 }
  0x19   : > { %374 = vperm.xlu1 %2802, %v3195_v2   ;;  %560 = vperm.xlu0 %2805, %v331_v3   ;;  %v3223_v10 = vld [vmem:[%s4874_s1 + $0x38] sm:$0xff]  ;;  %v342_v14 = vld [vmem:[%s4874_s1 + $0x60] sm:$0xff]  ;;  %v344_v15 = vld [vmem:[%s4874_s1 + $0x70] sm:$0xff] }
  0x1a   : > { %v3232_v12 = vld [vmem:[%s4874_s1 + $0x58] sm:$0xff]  ;;  %v3247_v16 = vld [vmem:[%s4874_s1 + $0x88] sm:$0xff]  ;;  %v3252_v17 = vld [vmem:[%s4874_s1 + $0x80] sm:$0xff]  ;;  %s2758_s23 = sshll.u32 %s326_s10, 1  ;;  %s323_s10 = sand.u32 1, %s3074_s12  }
  0x1b   : > { %v356_v18 = vld [vmem:[%s4874_s1 + $0xd0] sm:$0xff]  ;;  %v350_v19 = vld [vmem:[%s4874_s1 + $0xa0] sm:$0xff]  ;;  %v3265_v20 = vld [vmem:[%s4874_s1 + $0x98] sm:$0xff]  ;;  %s328_s26 = scalar_lea.vmem %s4873_s0, %s2758_s23  ;;  %s324_s22 = scalar_lea.vmem [#allocation3], %s323_s10 }
  0x1c   : > { %v3271_v21 = vld [vmem:[%s4874_s1 + $0xb8] sm:$0xff]  ;;  %v3276_v22 = vld [vmem:[%s4874_s1 + $0xb0] sm:$0xff]  ;;  %v3286_v24 = vld [vmem:[%s4874_s1 + $0xc8] sm:$0xff]  ;;  %s2697_s23 = sshll.u32 %s324_s22, 4  ;;  %s2687_s25 = scalar_lea.sflag [#allocation4], %s323_s10  ;;  %s2698_s23 = int_to_ptr.vmem [resolvable:$true] %s2697_s23 }
  0x1d   : > { %v336_v23 = vld [vmem:[%s4874_s1 + $0x30] sm:$0xff]  ;;  %v359_v25 = vld [vmem:[%s4874_s1 + $0xe8] sm:$0xff]  ;;  %v358_v26 = vld [vmem:[%s4874_s1 + $0xe0] sm:$0xff] }
  0x1e   : > { %v330_v27 = vld [vmem:[%s4874_s1] sm:$0xff]  ;;  %v361_v28 = vld [vmem:[%s4874_s1 + $0xf8] sm:$0xff]  ;;  %v339_v30 = vld [vmem:[%s4874_s1 + $0x48] sm:$0xff] }
  0x1f   : > { %v360_v33 = vld [vmem:[%s4874_s1 + $0xf0] sm:$0xff]  ;;  %v763_v34 = vld [vmem:[%s4875_s2 + $0x78] sm:$0xff]  ;;  %v3347_v43 = vld [vmem:[%s4874_s1 + $0xa8] sm:$0xff] }
  0x20   : > { %389 = vperm.xlu2 %2803, %v335_v6   ;;  %v3332_v38 = vld [vmem:[%s4874_s1 + $0x90] sm:$0xff]  ;;  %v354_v47 = vld [vmem:[%s4874_s1 + $0xc0] sm:$0xff]  ;;  %v761_v48 = vld [vmem:[%s4875_s2 + $0x68] sm:$0xff] }
  0x21   : > { %379 = vperm.xlu1 %2802, %v333_v7   ;;  %616 = vperm.xlu0 %2805, %v3214_v8   ;;  %v762_v39 = vld [vmem:[%s4875_s2 + $0x70] sm:$0xff]  ;;  %v357_v53 = vld [vmem:[%s4874_s1 + $0xd8] sm:$0xff]  ;;  %v760_v55 = vld [vmem:[%s4875_s2 + $0x60] sm:$0xff] }
  0x22   : > { %v778_v50 = vld [vmem:[%s4875_s2 + $0xf0] sm:$0xff]  ;;  %v777_v59 = vld [vmem:[%s4875_s2 + $0xe8] sm:$0xff]  ;;  %v779_v62 = vld [vmem:[%s4875_s2 + $0xf8] sm:$0xff] }
  0x23   : > { %v759_v0 = vld [vmem:[%s4875_s2 + $0x58] sm:$0xff] }
  0x28   : > { %404 = vperm.xlu2 %2803, %v338_v9  }
  0x29   : > { %399 = vperm.xlu1 %2802, %v3223_v10   ;;  %608 = vperm.xlu0 %2805, %v343_v11  }
  0x30   : > { %419 = vperm.xlu2 %2803, %v3232_v12  }
  0x31   : > { %414 = vperm.xlu1 %2802, %v340_v13   ;;  %604 = vperm.xlu0 %2805, %v342_v14  }
  0x38   : > { %434 = vperm.xlu2 %2803, %v344_v15  }
  0x39   : > { %429 = vperm.xlu1 %2802, %v343_v11   ;;  %596 = vperm.xlu0 %2805, %v340_v13   ;;  %v758_v11 = vld [vmem:[%s4875_s2 + $0x50] sm:$0xff] }
  0x40   : > { %449 = vperm.xlu2 %2803, %v3247_v16  }
  0x41   : > { %444 = vperm.xlu1 %2802, %v3252_v17   ;;  %660 = vperm.xlu0 %2805, %v356_v18  }
  0x48   : > { %464 = vperm.xlu2 %2803, %v350_v19  }
  0x49   : > { %459 = vperm.xlu1 %2802, %v3265_v20   ;;  %588 = vperm.xlu0 %2805, %v338_v9  }
  0x50   : > { %479 = vperm.xlu2 %2803, %v3271_v21  }
  0x51   : > { %474 = vperm.xlu1 %2802, %v3276_v22   ;;  %580 = vperm.xlu0 %2805, %v336_v23  }
  0x58   : > { %494 = vperm.xlu2 %2803, %v356_v18   ;;  %v769_v18 = vld [vmem:[%s4875_s2 + $0xa8] sm:$0xff] }
  0x59   : > { %489 = vperm.xlu1 %2802, %v3286_v24   ;;  %636 = vperm.xlu0 %2805, %v350_v19  }
  0x60   : > { %509 = vperm.xlu2 %2803, %v359_v25  }
  0x61   : > { %504 = vperm.xlu1 %2802, %v358_v26   ;;  %2823 = vset.pattern.permute.xlu0 %v4883_v5 }
  0x62   : > { %364 = vperm.xlu0 %2823, %v330_v27  }
  0x68   : > { %2804 = vset.pattern.permute.xlu2 %v4885_v4 }
  0x69   : > { %519 = vperm.xlu1 %2802, %v361_v28   ;;  %556 = vperm.xlu2 %2804, %v330_v27  }
  0x6a   : > { %369 = vperm.xlu0 %2823, %v331_v3   ;;  %v776_v3 = vld [vmem:[%s4875_s2 + $0xe0] sm:$0xff] }
  0x71   : > { %2806 = vset.pattern.permute.xlu1 %v4885_v4  ;;  %568 = vperm.xlu2 %2804, %v333_v7  }
  0x72   : > { %564 = vperm.xlu1 %2806, %v3195_v2   ;;  %394 = vperm.xlu0 %2823, %v336_v23   ;;  %v3305_v29 = vpop.permute.xlu2 %384 }
  0x79   : > { %576 = vperm.xlu2 %2804, %v335_v6   ;;  %v775_v6 = vld [vmem:[%s4875_s2 + $0xd8] sm:$0xff] }
  0x7a   : > { %572 = vperm.xlu1 %2806, %v3190_v1   ;;  %409 = vperm.xlu0 %2823, %v339_v30   ;;  %v3311_v31 = vpop.permute.xlu2 %389 }
  0x81   : > { %680 = vperm.xlu2 %2804, %v361_v28  }
  0x82   : > { %612 = vperm.xlu1 %2806, %v344_v15   ;;  %424 = vperm.xlu0 %2823, %v342_v14   ;;  %v3313_v32 = vpop.permute.xlu2 %404 }
  0x89   : > { %2807 = vset.pattern.permute.xlu2 %v4883_v5 }
  0x8a   : > { %676 = vperm.xlu1 %2806, %v360_v33   ;;  %439 = vperm.xlu0 %2823, %v3214_v8   ;;  %v3323_v35 = vpop.permute.xlu2 %419 }
  0x8b   : > { %v3325_v36 = vpop.permute.xlu1 %374  ;;  %v3327_v37 = vpop.permute.xlu0 %560  ;;  %857 = vperm.xlu2 %2807, %v763_v34   ;;  %v749_v34 = vld [vmem:[%s4875_s2 + $0x8] sm:$0xff] }
  0x92   : > { %672 = vperm.xlu1 %2806, %v359_v25   ;;  %454 = vperm.xlu0 %2823, %v3332_v38   ;;  %v3338_v40 = vpop.permute.xlu2 %434  ;;  %v757_v25 = vld [vmem:[%s4875_s2 + $0x48] sm:$0xff] }
  0x93   : > { %v3340_v41 = vpop.permute.xlu1 %379  ;;  %v3342_v42 = vpop.permute.xlu0 %616  ;;  %852 = vperm.xlu2 %2807, %v762_v39  }
  0x9a   : > { %600 = vperm.xlu1 %2806, %v3232_v12   ;;  %469 = vperm.xlu0 %2823, %v3347_v43   ;;  %v3351_v44 = vpop.permute.xlu2 %449  ;;  %v755_v12 = vld [vmem:[%s4875_s2 + $0x38] sm:$0xff] }
  0x9b   : > { %v3353_v45 = vpop.permute.xlu1 %399  ;;  %v3355_v46 = vpop.permute.xlu0 %608  ;;  %2808 = vset.pattern.permute.xlu2 %v4885_v4 }
  0x9c   : > { %668 = vperm.xlu2 %2808, %v358_v26   ;;  %v750_v26 = vld [vmem:[%s4875_s2 + $0x10] sm:$0xff] }
  0xa2   : > { %2809 = vset.pattern.permute.xlu1 %v4883_v5  ;;  %484 = vperm.xlu0 %2823, %v354_v47   ;;  %v3365_v49 = vpop.permute.xlu2 %464 }
  0xa3   : > { %847 = vperm.xlu1 %2809, %v761_v48   ;;  %v3370_v51 = vpop.permute.xlu1 %414  ;;  %v3372_v52 = vpop.permute.xlu0 %604 }
  0xa4   : > { %2810 = vset.pattern.permute.xlu2 %v4883_v5 }
  0xa5   : > { %932 = vperm.xlu2 %2810, %v778_v50   ;;  %v773_v50 = vld [vmem:[%s4875_s2 + $0xc8] sm:$0xff] }
  0xaa   : > { %499 = vperm.xlu0 %2823, %v357_v53   ;;  %v3378_v54 = vpop.permute.xlu2 %479 }
  0xab   : > { %2811 = vset.pattern.permute.xlu1 %v4885_v4  ;;  %v3384_v56 = vpop.permute.xlu1 %429  ;;  %v3386_v57 = vpop.permute.xlu0 %596 }
  0xac   : > { %664 = vperm.xlu1 %2811, %v357_v53   ;;  %v765_v53 = vld [vmem:[%s4875_s2 + $0x88] sm:$0xff] }
  0xad   : > { %842 = vperm.xlu2 %2810, %v760_v55  }
  0xb2   : > { %514 = vperm.xlu0 %2823, %v360_v33   ;;  %v3388_v58 = vpop.permute.xlu2 %494  ;;  %v756_v33 = vld [vmem:[%s4875_s2 + $0x40] sm:$0xff] }
  0xb3   : > { %v3393_v60 = vpop.permute.xlu1 %444  ;;  %v3395_v61 = vpop.permute.xlu0 %660 }
  0xb4   : > { %4888 = vst [vmem:[#allocation6_spill] sm:$0xff] %v3393_v60  ;;  %2812 = vset.pattern.permute.xlu1 %v4883_v5 }
  0xb5   : > { %927 = vperm.xlu1 %2812, %v777_v59   ;;  %2813 = vset.pattern.permute.xlu2 %v4885_v4 }
  0xb6   : > { %592 = vperm.xlu2 %2813, %v339_v30  }
  0xba   : > { %937 = vperm.xlu0 %2823, %v779_v62   ;;  %v3402_v63 = vpop.permute.xlu2 %509  ;;  %v772_v62 = vld [vmem:[%s4875_s2 + $0xc0] sm:$0xff] }
  0xbb   : > { %v3407_v1 = vpop.permute.xlu1 %459  ;;  %v3409_v2 = vpop.permute.xlu0 %588 }
  0xbc   : > { %4889 = vst [vmem:[#allocation7_spill] sm:$0xff] %v3407_v1 }
  0xbd   : > { %837 = vperm.xlu1 %2812, %v759_v0   ;;  %v1197_v0 = vld [vmem:[%s4877_s4 + $0x8] sm:$0xff] }
  0xbe   : > { %2814 = vset.pattern.permute.xlu2 %v4883_v5 }
  0xbf   : > { %922 = vperm.xlu2 %2814, %v776_v3   ;;  %v329_v3 = vld [vmem:[%s328_s26] sm:$0x3]  ;;  %s3034_s26 = sshra.s32 %s2700_s24, 4  ;;  %s3035_s26 = int_to_ptr.hbm [resolvable:$true] %s3034_s26 }
  0xc0   : > { %s3036_s27 = scalar_lea.hbm %s3035_s26, 1  ;;  %p3041_p0 = scmp.lt.s32.totalorder %s3035_s26, %s4882_s9 }
  0xc1   : > { %p3037_p11 = scmp.ne.s32.totalorder %s3035_s26, %s3036_s27  ;;  %p3042_p1 = scmp.lt.s32.totalorder %s3040_s29, %s3036_s27 }
  0xc2   : > { %917 = vperm.xlu0 %2823, %v775_v6   ;;  %v3505_v6 = vperm.slane %v329_v3, 1 }
  0xc3   : > { %v3418_v7 = vpop.permute.xlu1 %474  ;;  %v3420_v8 = vpop.permute.xlu0 %580  ;;  %p3038_p12 = pnand %p3037_p11, %p3177_p5  ;;  %p3043_p2 = por %p3042_p1, %p3041_p0 }
  0xc4   : > { %v3422_v9 = vpop.permute.xlu2 %556 }
  0xc5   : > { %2815 = vset.pattern.permute.xlu1 %v4885_v4  ;;  %p3039_p13 = pneg %p3038_p12 }
  0xc6   : > { %656 = vperm.xlu1 %2815, %v3286_v24  }
  0xc7   : > { %832 = vperm.xlu2 %2814, %v758_v11   ;;  %p3044_p3 = pnand %p3043_p2, %p3039_p13 }
  0xca   : > { %817 = vperm.xlu0 %2823, %v755_v12  }
  0xcb   : > { %v3432_v13 = vpop.permute.xlu1 %489  ;;  %v3434_v14 = vpop.permute.xlu0 %636 }
  0xcc   : > { %v3436_v15 = vpop.permute.xlu2 %568 }
  0xce   : > { %584 = vperm.xlu1 %2815, %v3223_v10   ;;  %v774_v10 = vld [vmem:[%s4875_s2 + $0xd0] sm:$0xff] }
  0xcf   : > { %2816 = vset.pattern.permute.xlu2 %v4885_v4 }
  0xd0   : > { %652 = vperm.xlu2 %2816, %v354_v47  }
  0xd2   : > { %887 = vperm.xlu0 %2823, %v769_v18  }
  0xd3   : > { %v3443_v19 = vpop.permute.xlu1 %504 }
  0xd4   : > { %v3445_v23 = vpop.permute.xlu0 %364  ;;  %v3447_v24 = vpop.permute.xlu2 %576 }
  0xd6   : > { %2817 = vset.pattern.permute.xlu1 %v4883_v5 }
  0xd7   : > { %827 = vperm.xlu1 %2817, %v757_v25  }
  0xd8   : > { %2818 = vset.pattern.permute.xlu2 %v4883_v5 }
  0xd9   : > { %912 = vperm.xlu2 %2818, %v774_v10  }
  0xda   : > { %792 = vperm.xlu0 %2823, %v750_v26   ;;  %v754_v26 = vld [vmem:[%s4875_s2 + $0x30] sm:$0xff] }
  0xdb   : > { %v3460_v27 = vpop.permute.xlu1 %519 }
  0xdc   : > { %v3462_v28 = vpop.permute.xlu0 %369  ;;  %v3464_v30 = vpop.permute.xlu2 %680 }
  0xdf   : > { %2819 = vset.pattern.permute.xlu1 %v4885_v4 }
  0xe0   : > { %648 = vperm.xlu1 %2819, %v3271_v21  }
  0xe1   : > { %822 = vperm.xlu2 %2818, %v756_v33  }
  0xe2   : > { %787 = vperm.xlu0 %2823, %v749_v34   ;;  %v771_v34 = vld [vmem:[%s4875_s2 + $0xb8] sm:$0xff] }
  0xe4   : > { %v3475_v39 = vpop.permute.xlu1 %564  ;;  %v3477_v47 = vpop.permute.xlu0 %394 }
  0xe5   : > { %v858_v48 = vpop.permute.xlu2 %857 }
  0xe8   : > { %2820 = vset.pattern.permute.xlu1 %v4883_v5 }
  0xe9   : > { %907 = vperm.xlu1 %2820, %v773_v50   ;;  %2821 = vset.pattern.permute.xlu2 %v4885_v4 }
  0xea   : > { %867 = vperm.xlu0 %2823, %v765_v53   ;;  %644 = vperm.xlu2 %2821, %v3276_v22   ;;  %v3503_v22 = vperm.slane %v329_v3, 0  ;;  %v753_v3 = vld [vmem:[%s4875_s2 + $0x28] sm:$0xff] }
  0xec   : > { %v3489_v21 = vpop.permute.xlu1 %572  ;;  %v3491_v55 = vpop.permute.xlu0 %409  ;;  %v537_v18 = vmul.f32 %v3503_v22, %v3338_v40 }
  0xed   : > { %v853_v59 = vpop.permute.xlu2 %852 }
  0xf1   : > { %902 = vperm.xlu1 %2820, %v772_v62   ;;  %v699_v62 = vmul.f32 %v3505_v6, %v3342_v42 }
  0xf2   : > { %1235 = vperm.xlu0 %2823, %v1197_v0   ;;  %640 = vperm.xlu2 %2821, %v3347_v43   ;;  %v1200_v43 = vld [vmem:[%s4877_s4 + $0x20] sm:$0xff] }
  0xf4   : > { %v613_v11 = vpop.permute.xlu1 %612  ;;  %v425_v12 = vpop.permute.xlu0 %424 }
  0xf5   : > { %v698_v25 = vmul.f32 %v3505_v6, %v613_v11 }
  0xf6   : > { %v3510_v10 = vpop.permute.xlu2 %668 }
  0xf7   : > { %v730_v33 = vadd.f32 %v698_v25, %v537_v18 }
  0xf9   : > { %812 = vperm.xlu1 %2820, %v754_v26   ;;  %v954_v40 = vadd.f32 %v853_v59, %v730_v33  ;;  %v1203_v59 = vld [vmem:[%s4877_s4 + $0x38] sm:$0xff]  ;;  %v770_v26 = vld [vmem:[%s4875_s2 + $0xb0] sm:$0xff] }
  0xfa   : > { %1250 = vperm.xlu0 %2823, %v1200_v43   ;;  %2822 = vset.pattern.permute.xlu2 %v4883_v5 }
  0xfb   : > { %897 = vperm.xlu2 %2822, %v771_v34   ;;  %v986_v11 = vmul.f32 0.5, %v954_v40 }
  0xfc   : > { %v3522_v50 = vpop.permute.xlu1 %676  ;;  %v440_v53 = vpop.permute.xlu0 %439 }
  0xfd   : > { %v538_v0 = vmul.f32 %v3503_v22, %v440_v53  ;;  %2828 = vtanh.f32 %v986_v11  ;;  %v1206_v53 = vld [vmem:[%s4877_s4 + $0x50] sm:$0xff] }
  0xff   : > { %v731_v18 = vadd.f32 %v699_v62, %v538_v0  ;;  %v3530_v25 = vpop.permute.xlu2 %932  ;;  %v535_v0 = vmul.f32 %v3503_v22, %v425_v12 }
 0x101   : > { %807 = vperm.xlu1 %2820, %v753_v3   ;;  %v955_v42 = vadd.f32 %v858_v48, %v731_v18  ;;  %v752_v48 = vld [vmem:[%s4875_s2 + $0x20] sm:$0xff]  ;;  %v696_v3 = vmul.f32 %v3505_v6, %v3372_v52 }
 0x102   : > { %1265 = vperm.xlu0 %2823, %v1203_v59  }
 0x103   : > { %892 = vperm.xlu2 %2822, %v770_v26   ;;  %v987_v33 = vmul.f32 0.5, %v955_v42  ;;  %v2829_v62 = vpop.eup %2828  ;;  %v728_v59 = vadd.f32 %v696_v3, %v535_v0 }
 0x104   : > { %v673_v43 = vpop.permute.xlu1 %672  ;;  %v3538_v34 = vpop.permute.xlu0 %454  ;;  %v1050_v18 = vmul.f32 0.5, %v2829_v62 }
 0x105   : > { %4890 = vst [vmem:[#allocation8_spill] sm:$0xff] %v3538_v34  ;;  %2830 = vtanh.f32 %v987_v33 }
 0x106   : > { %v1082_v52 = vadd.f32 0.5, %v1050_v18 }
 0x107   : > { %v843_v5 = vpop.permute.xlu2 %842 }
 0x108   : > { %v3555_v60 = vadd.f32 %v843_v5, %v728_v59  ;;  %v751_v5 = vld [vmem:[%s4875_s2 + $0x18] sm:$0xff]  ;;  %v1114_v3 = vmul.f32 %v1082_v52, %v954_v40  ;;  %v4891_v59 = vmov 0   ;;  %v4892_v40 = vmov 1  }
 0x109   : > { %2824 = vset.pattern.permute.xlu1 %v4885_v4  ;;  %v1211_v4 = vld [vmem:[%s4877_s4 + $0x78] sm:$0xff] }
 0x10a   : > { %632 = vperm.xlu1 %2824, %v3265_v20   ;;  %1280 = vperm.xlu0 %2823, %v1206_v53   ;;  %v697_v20 = vmul.f32 %v3505_v6, %v3355_v46  ;;  %v536_v53 = vmul.f32 %v3503_v22, %v3384_v56 }
 0x10b   : > { %v2831_v11 = vpop.eup %2830  ;;  %802 = vperm.xlu2 %2822, %v752_v48   ;;  %v984_v48 = vmul.f32 0.5, %v3555_v60 }
 0x10c   : > { %v3551_v26 = vpop.permute.xlu1 %600  ;;  %v3553_v12 = vpop.permute.xlu0 %469  ;;  %v1051_v33 = vmul.f32 0.5, %v2831_v11  ;;  %v729_v46 = vadd.f32 %v697_v20, %v536_v53  ;;  %v1224_v53 = vld [vmem:[%s4877_s4 + $0xe0] sm:$0xff] }
 0x10d   : > { %2832 = vtanh.f32 %v984_v48  ;;  %v712_v48 = vmul.f32 %v3505_v6, %v3510_v10  ;;  %v533_v10 = vmul.f32 %v3503_v22, %v3370_v51  ;;  %v554_v51 = vmul.f32 %v3503_v22, %v3460_v27  ;;  %v766_v27 = vld [vmem:[%s4875_s2 + $0x90] sm:$0xff] }
 0x10e   : > { %v1083_v34 = vadd.f32 0.5, %v1051_v33 }
 0x110   : > { %v3564_v62 = vpop.permute.xlu2 %592  ;;  %v1115_v0 = vmul.f32 %v1083_v34, %v955_v42  ;;  %v1209_v42 = vld [vmem:[%s4877_s4 + $0x68] sm:$0xff] }
 0x112   : > { %628 = vperm.xlu1 %2824, %v3332_v38   ;;  %1305 = vperm.xlu0 %2823, %v1211_v4   ;;  %v768_v38 = vld [vmem:[%s4875_s2 + $0xa0] sm:$0xff] }
 0x113   : > { %1388 = vmatpush.msra.mxu0 %v1115_v0  ;;  %797 = vperm.xlu2 %2822, %v751_v5   ;;  %v2833_v33 = vpop.eup %2832 }
 0x114   : > { %v3571_v11 = vpop.permute.xlu0 %484  ;;  %v1048_v0 = vmul.f32 0.5, %v2833_v33  ;;  %v552_v33 = vmul.f32 %v3503_v22, %v3402_v63  ;;  %v715_v63 = vmul.f32 %v3505_v6, %v3464_v30 }
 0x115   : > { %1389 = vmatpush.msra.mxu0 %v1114_v3  ;;  %v848_v56 = vpop.permute.xlu1 %847  ;;  %v767_v3 = vld [vmem:[%s4875_s2 + $0x98] sm:$0xff] }
 0x116   : > { %v953_v18 = vadd.f32 %v848_v56, %v729_v46 }
 0x118   : > { %v985_v34 = vmul.f32 0.5, %v953_v18 }
 0x119   : > { %v923_v4 = vpop.permute.xlu2 %922 }
 0x11a   : > { %2834 = vtanh.f32 %v985_v34  ;;  %2825 = vset.pattern.permute.xlu1 %v4891_v59  ;;  %1295 = vperm.xlu0 %2823, %v1209_v42   ;;  %v694_v42 = vmul.f32 %v3505_v6, %v3386_v57  ;;  %v713_v34 = vmul.f32 %v3505_v6, %v673_v43  ;;  %v714_v57 = vmul.f32 %v3505_v6, %v3522_v50  ;;  %v1221_v50 = vld [vmem:[%s4877_s4 + $0xc8] sm:$0xff] }
 0x11b   : > { %882 = vperm.xlu1 %2825, %v768_v38   ;;  %2826 = vset.pattern.permute.xlu2 %v4892_v40  ;;  %v1080_v40 = vadd.f32 0.5, %v1048_v0 }
 0x11c   : > { %v3581_v52 = vpop.permute.xlu0 %499  ;;  %624 = vperm.xlu2 %2826, %v3247_v16   ;;  %v551_v16 = vmul.f32 %v3503_v22, %v3443_v19  ;;  %v745_v0 = vadd.f32 %v713_v34, %v552_v33  ;;  %v747_v34 = vadd.f32 %v715_v63, %v554_v51  ;;  %v549_v33 = vmul.f32 %v3503_v22, %v3388_v58  ;;  %v764_v58 = vld [vmem:[%s4875_s2 + $0x80] sm:$0xff] }
 0x11d   : > { %v1196_v51 = vld [vmem:[%s4877_s4] sm:$0xff] }
 0x11e   : > { %v665_v20 = vpop.permute.xlu1 %664  ;;  %v744_v1 = vadd.f32 %v712_v48, %v551_v16 }
 0x120   : > { %v2835_v5 = vpop.eup %2834 }
 0x121   : > { %v833_v46 = vpop.permute.xlu2 %832  ;;  %v1049_v56 = vmul.f32 0.5, %v2835_v5 }
 0x122   : > { %1370 = vperm.xlu0 %2823, %v1224_v53   ;;  %v3605_v53 = vadd.f32 %v923_v4, %v744_v1  ;;  %v695_v4 = vmul.f32 %v3505_v6, %v3551_v26 }
 0x123   : > { %877 = vperm.xlu1 %2825, %v767_v3   ;;  %v1081_v38 = vadd.f32 0.5, %v1049_v56  ;;  %v726_v3 = vadd.f32 %v694_v42, %v533_v10 }
 0x124   : > { %v515_v5 = vpop.permute.xlu0 %514  ;;  %620 = vperm.xlu2 %2826, %v3252_v17   ;;  %v1112_v17 = vmul.f32 %v1080_v40, %v3555_v60  ;;  %v1000_v60 = vmul.f32 0.5, %v3605_v53 }
 0x125   : > { %v553_v19 = vmul.f32 %v3503_v22, %v515_v5  ;;  %v1113_v43 = vmul.f32 %v1081_v38, %v953_v18  ;;  %v3615_v18 = vadd.f32 %v833_v46, %v726_v3  ;;  %v748_v46 = vld [vmem:[%s4875_s2] sm:$0xff]  ;;  %v710_v5 = vmul.f32 %v3505_v6, %v3395_v61 }
 0x126   : > { %v550_v61 = vmul.f32 %v3503_v22, %v3581_v52 }
 0x127   : > { %v746_v48 = vadd.f32 %v714_v57, %v553_v19  ;;  %v928_v56 = vpop.permute.xlu1 %927  ;;  %1390 = vmatpush.msra.mxu0 %v1113_v43  ;;  %v982_v26 = vmul.f32 0.5, %v3615_v18  ;;  %v711_v19 = vmul.f32 %v3505_v6, %v665_v20  ;;  %v742_v20 = vadd.f32 %v710_v5, %v549_v33 }
 0x128   : > { %v3617_v1 = vadd.f32 %v928_v56, %v745_v0 }
 0x129   : > { %1391 = vmatpush.msra.mxu0 %v1112_v17  ;;  %v3623_v30 = vadd.f32 %v3530_v25, %v746_v48  ;;  %v534_v25 = vmul.f32 %v3503_v22, %v3323_v35  ;;  %v743_v56 = vadd.f32 %v711_v19, %v550_v61 }
 0x12a   : > { %1355 = vperm.xlu0 %2823, %v1221_v50   ;;  %v3628_v42 = vpop.permute.xlu2 %652  ;;  %v1001_v16 = vmul.f32 0.5, %v3617_v1 }
 0x12b   : > { %872 = vperm.xlu1 %2825, %v766_v27   ;;  %v1002_v38 = vmul.f32 0.5, %v3623_v30  ;;  %v727_v57 = vadd.f32 %v695_v4, %v534_v25  ;;  %v1215_v25 = vld [vmem:[%s4877_s4 + $0x98] sm:$0xff] }
 0x12c   : > { %v938_v40 = vpop.permute.xlu0 %937  ;;  %2827 = vset.pattern.permute.xlu2 %v4891_v59  ;;  %v1218_v59 = vld [vmem:[%s4877_s4 + $0xb0] sm:$0xff] }
 0x12d   : > { %v971_v10 = vadd.f32 %v938_v40, %v747_v34  ;;  %782 = vperm.xlu2 %2827, %v748_v46   ;;  %2836 = vtanh.f32 %v1002_v38  ;;  %v1198_v40 = vld [vmem:[%s4877_s4 + $0x10] sm:$0xff] }
 0x12e   : > { %2838 = vtanh.f32 %v1000_v60 }
 0x12f   : > { %2840 = vtanh.f32 %v1001_v16  ;;  %v1003_v35 = vmul.f32 0.5, %v971_v10  ;;  %v838_v43 = vpop.permute.xlu1 %837 }
 0x130   : > { %2842 = vtanh.f32 %v982_v26  ;;  %v951_v3 = vadd.f32 %v838_v43, %v727_v57 }
 0x131   : > { %2844 = vtanh.f32 %v1003_v35  ;;  %v1199_v35 = vld [vmem:[%s4877_s4 + $0x18] sm:$0xff] }
 0x132   : > { %v983_v0 = vmul.f32 0.5, %v951_v3  ;;  %1340 = vperm.xlu0 %2823, %v1218_v59  }
 0x133   : > { %v2837_v63 = vpop.eup %2836  ;;  %862 = vperm.xlu1 %2825, %v764_v58   ;;  %v913_v48 = vpop.permute.xlu2 %912 }
 0x134   : > { %v2839_v17 = vpop.eup %2838  ;;  %2846 = vtanh.f32 %v983_v0  ;;  %v3655_v50 = vadd.f32 %v913_v48, %v742_v20  ;;  %v918_v27 = vpop.permute.xlu0 %917  ;;  %v1066_v16 = vmul.f32 0.5, %v2837_v63  ;;  %v692_v20 = vmul.f32 %v3505_v6, %v3409_v2 }
 0x135   : > { %v2841_v4 = vpop.eup %2840  ;;  %v3657_v60 = vadd.f32 %v918_v27, %v743_v56  ;;  %1230 = vperm.xlu2 %2827, %v1196_v51   ;;  %v1064_v58 = vmul.f32 0.5, %v2839_v17 }
 0x136   : > { %v2843_v52 = vpop.eup %2842  ;;  %v998_v46 = vmul.f32 0.5, %v3655_v50  ;;  %v1065_v5 = vmul.f32 0.5, %v2841_v4  ;;  %v1098_v59 = vadd.f32 0.5, %v1066_v16  ;;  %v531_v4 = vmul.f32 %v3503_v22, %v3313_v32  ;;  %v1201_v32 = vld [vmem:[%s4877_s4 + $0x28] sm:$0xff] }
 0x137   : > { %v2845_v34 = vpop.eup %2844  ;;  %v999_v38 = vmul.f32 0.5, %v3657_v60  ;;  %v1046_v57 = vmul.f32 0.5, %v2843_v52 }
 0x138   : > { %2848 = vtanh.f32 %v998_v46  ;;  %v3664_v26 = vpop.permute.xlu1 %656  ;;  %v1067_v33 = vmul.f32 0.5, %v2845_v34  ;;  %v1097_v63 = vadd.f32 0.5, %v1065_v5  ;;  %v1130_v52 = vmul.f32 %v1098_v59, %v3623_v30  ;;  %v1212_v34 = vld [vmem:[%s4877_s4 + $0x80] sm:$0xff] }
 0x139   : > { %2850 = vtanh.f32 %v999_v38  ;;  %v1078_v56 = vadd.f32 0.5, %v1046_v57  ;;  %v1096_v46 = vadd.f32 0.5, %v1064_v58  ;;  %v530_v30 = vmul.f32 %v3503_v22, %v3353_v45 }
 0x13a   : > { %v2847_v19 = vpop.eup %2846  ;;  %1325 = vperm.xlu0 %2823, %v1215_v25   ;;  %v1099_v43 = vadd.f32 0.5, %v1067_v33  ;;  %v1129_v25 = vmul.f32 %v1097_v63, %v3617_v1  ;;  %v1202_v1 = vld [vmem:[%s4877_s4 + $0x30] sm:$0xff]  ;;  %v532_v45 = vmul.f32 %v3503_v22, %v3491_v55 }
 0x13b   : > { %1240 = vperm.xlu1 %2825, %v1198_v40   ;;  %v823_v61 = vpop.permute.xlu2 %822  ;;  %v1047_v0 = vmul.f32 0.5, %v2847_v19  ;;  %v1110_v33 = vmul.f32 %v1078_v56, %v3615_v18  ;;  %v1128_v57 = vmul.f32 %v1096_v46, %v3605_v53  ;;  %v693_v18 = vmul.f32 %v3505_v6, %v3564_v62  ;;  %v1840_v55 = vld [vmem:[%s4879_s6 + $0x10] sm:$0xff]  ;;  %v1204_v62 = vld [vmem:[%s4877_s4 + $0x40] sm:$0xff]  ;;  %v1207_v46 = vld [vmem:[%s4877_s4 + $0x58] sm:$0xff] }
 0x13c   : > { %v1131_v51 = vmul.f32 %v1099_v43, %v971_v10  ;;  %v724_v10 = vadd.f32 %v692_v20, %v531_v4  ;;  %v818_v59 = vpop.permute.xlu0 %817  ;;  %v1843_v4 = vld [vmem:[%s4879_s6 + $0x28] sm:$0xff] }
 0x13d   : > { %1245 = vperm.xlu2 %2827, %v1199_v35   ;;  %v1079_v48 = vadd.f32 0.5, %v1047_v0 }
 0x13e   : > { %v2849_v27 = vpop.eup %2848  ;;  %1501 = vmatpush.msra.mxu1 %v1131_v51  ;;  %v3688_v5 = vadd.f32 %v823_v61, %v724_v10  ;;  %v725_v51 = vadd.f32 %v693_v18, %v532_v45 }
 0x13f   : > { %v2851_v17 = vpop.eup %2850  ;;  %v1111_v16 = vmul.f32 %v1079_v48, %v951_v3  ;;  %v1062_v2 = vmul.f32 0.5, %v2849_v27 }
 0x140   : > { %v585_v38 = vpop.permute.xlu1 %584  ;;  %1502 = vmatpush.msra.mxu1 %v1130_v52  ;;  %v1063_v40 = vmul.f32 0.5, %v2851_v17  ;;  %v980_v0 = vmul.f32 0.5, %v3688_v5 }
 0x141   : > { %v691_v3 = vmul.f32 %v3505_v6, %v585_v38  ;;  %1392 = vmatpush.msra.mxu0 %v1111_v16  ;;  %v1094_v35 = vadd.f32 0.5, %v1062_v2 }
 0x142   : > { %1310 = vperm.xlu0 %2823, %v1212_v34   ;;  %1503 = vmatpush.msra.mxu1 %v1129_v25  ;;  %v1095_v19 = vadd.f32 0.5, %v1063_v40  ;;  %2852 = vtanh.f32 %v980_v0  ;;  %v1208_v34 = vld [vmem:[%s4877_s4 + $0x60] sm:$0xff] }
 0x143   : > { %v723_v43 = vadd.f32 %v691_v3, %v530_v30  ;;  %1255 = vperm.xlu1 %2825, %v1201_v32   ;;  %1393 = vmatpush.msra.mxu0 %v1110_v33  ;;  %v1126_v20 = vmul.f32 %v1094_v35, %v3655_v50  ;;  %v1205_v50 = vld [vmem:[%s4877_s4 + $0x48] sm:$0xff]  ;;  %v546_v30 = vmul.f32 %v3503_v22, %v3378_v54  ;;  %v1210_v54 = vld [vmem:[%s4877_s4 + $0x70] sm:$0xff] }
 0x144   : > { %v645_v58 = vpop.permute.xlu2 %644  ;;  %1504 = vmatpush.msra.mxu1 %v1128_v57  ;;  %v1127_v53 = vmul.f32 %v1095_v19, %v3657_v60  ;;  %v709_v3 = vmul.f32 %v3505_v6, %v3664_v26  ;;  %v1846_v57 = vld [vmem:[%s4879_s6 + $0x40] sm:$0xff]  ;;  %v548_v35 = vmul.f32 %v3503_v22, %v3432_v13  ;;  %v544_v26 = vmul.f32 %v3503_v22, %v3553_v12  ;;  %v1227_v13 = vld [vmem:[%s4877_s4 + $0xf8] sm:$0xff] }
 0x145   : > { %1260 = vperm.xlu2 %2827, %v1202_v1   ;;  %v3699_v61 = vadd.f32 %v818_v59, %v723_v43  ;;  %v706_v43 = vmul.f32 %v3505_v6, %v645_v58  ;;  %v888_v58 = vpop.permute.xlu0 %887 }
 0x146   : > { %1505 = vmatpush.msra.mxu1 %v1127_v53  ;;  %v545_v53 = vmul.f32 %v3503_v22, %v3418_v7  ;;  %v741_v0 = vadd.f32 %v709_v3, %v548_v35 }
 0x147   : > { %v979_v60 = vmul.f32 0.5, %v3699_v61 }
 0x148   : > { %1506 = vmatpush.msra.mxu1 %v1126_v20  ;;  %v2853_v52 = vpop.eup %2852 }
 0x149   : > { %v828_v63 = vpop.permute.xlu1 %827  ;;  %2854 = vtanh.f32 %v979_v60  ;;  %v1044_v2 = vmul.f32 0.5, %v2853_v52  ;;  %v738_v60 = vadd.f32 %v706_v43, %v545_v53  ;;  %v526_v43 = vmul.f32 %v3503_v22, %v3340_v41 }
 0x14a   : > { %v949_v48 = vadd.f32 %v828_v63, %v725_v51  ;;  %1882 = vperm.xlu0 %2823, %v1840_v55  }
 0x14b   : > { %1270 = vperm.xlu1 %2825, %v1204_v62   ;;  %v1076_v19 = vadd.f32 0.5, %v1044_v2 }
 0x14c   : > { %v981_v56 = vmul.f32 0.5, %v949_v48  ;;  %v641_v27 = vpop.permute.xlu2 %640 }
 0x14d   : > { %1275 = vperm.xlu2 %2827, %v1205_v50   ;;  %v705_v33 = vmul.f32 %v3505_v6, %v641_v27  ;;  %v1108_v51 = vmul.f32 %v1076_v19, %v3688_v5  ;;  %v1849_v5 = vld [vmem:[%s4879_s6 + $0x58] sm:$0xff]  ;;  %v793_v2 = vpop.permute.xlu0 %792 }
 0x14e   : > { %2856 = vtanh.f32 %v981_v56 }
 0x14f   : > { %v2855_v17 = vpop.eup %2854  ;;  %v737_v20 = vadd.f32 %v705_v33, %v544_v26  ;;  %v527_v33 = vmul.f32 %v3503_v22, %v3305_v29 }
 0x150   : > { %v1043_v40 = vmul.f32 0.5, %v2855_v17  ;;  %v1225_v17 = vld [vmem:[%s4877_s4 + $0xe8] sm:$0xff] }
 0x151   : > { %v3755_v27 = vadd.f32 %v888_v58, %v737_v20 }
 0x152   : > { %v649_v16 = vpop.permute.xlu1 %648  ;;  %1897 = vperm.xlu0 %2823, %v1843_v4   ;;  %v1075_v59 = vadd.f32 0.5, %v1043_v40  ;;  %v547_v4 = vmul.f32 %v3503_v22, %v3571_v11 }
 0x153   : > { %1285 = vperm.xlu1 %2825, %v1207_v46   ;;  %v707_v38 = vmul.f32 %v3505_v6, %v649_v16 }
 0x154   : > { %v2857_v10 = vpop.eup %2856  ;;  %v1107_v7 = vmul.f32 %v1075_v59, %v3699_v61 }
 0x155   : > { %1290 = vperm.xlu2 %2827, %v1208_v34   ;;  %v898_v25 = vpop.permute.xlu2 %897  ;;  %v1045_v32 = vmul.f32 0.5, %v2857_v10  ;;  %v739_v45 = vadd.f32 %v707_v38, %v546_v30  ;;  %v993_v34 = vmul.f32 0.5, %v3755_v27  ;;  %v1852_v30 = vld [vmem:[%s4879_s6 + $0x70] sm:$0xff] }
 0x157   : > { %v1077_v1 = vadd.f32 0.5, %v1045_v32  ;;  %v3745_v62 = vadd.f32 %v898_v25, %v739_v45  ;;  %v529_v25 = vmul.f32 %v3503_v22, %v3477_v47  ;;  %v688_v32 = vmul.f32 %v3505_v6, %v3489_v21  ;;  %v1223_v21 = vld [vmem:[%s4877_s4 + $0xd8] sm:$0xff] }
 0x158   : > { %v687_v47 = vmul.f32 %v3505_v6, %v3436_v15  ;;  %v525_v15 = vmul.f32 %v3503_v22, %v3325_v36  ;;  %v685_v36 = vmul.f32 %v3505_v6, %v3327_v37 }
 0x159   : > { %v1109_v18 = vmul.f32 %v1077_v1, %v949_v48  ;;  %v708_v48 = vmul.f32 %v3505_v6, %v3628_v42  ;;  %v995_v52 = vmul.f32 0.5, %v3745_v62  ;;  %v1226_v42 = vld [vmem:[%s4877_s4 + $0xf0] sm:$0xff]  ;;  %v686_v1 = vmul.f32 %v3505_v6, %v3475_v39 }
 0x15a   : > { %1912 = vperm.xlu0 %2823, %v1846_v57   ;;  %v690_v57 = vmul.f32 %v3505_v6, %v3420_v8  ;;  %v720_v29 = vadd.f32 %v688_v32, %v527_v33  ;;  %v1222_v8 = vld [vmem:[%s4877_s4 + $0xd0] sm:$0xff]  ;;  %v524_v39 = vmul.f32 %v3503_v22, %v3462_v28  ;;  %v719_v53 = vadd.f32 %v687_v47, %v526_v43 }
 0x15b   : > { %1300 = vperm.xlu1 %2825, %v1210_v54   ;;  %v908_v55 = vpop.permute.xlu1 %907  ;;  %1394 = vmatpush.msra.mxu0 %v1109_v18  ;;  %v740_v46 = vadd.f32 %v708_v48, %v547_v4 }
 0x15c   : > { %v965_v12 = vadd.f32 %v908_v55, %v741_v0  ;;  %v722_v45 = vadd.f32 %v690_v57, %v529_v25  ;;  %v717_v37 = vadd.f32 %v685_v36, %v524_v39  ;;  %v1213_v36 = vld [vmem:[%s4877_s4 + $0x88] sm:$0xff] }
 0x15d   : > { %1385 = vperm.xlu2 %2827, %v1227_v13   ;;  %v893_v63 = vpop.permute.xlu2 %892  ;;  %1395 = vmatpush.msra.mxu0 %v1108_v51  ;;  %v718_v13 = vadd.f32 %v686_v1, %v525_v15  ;;  %v689_v51 = vmul.f32 %v3505_v6, %v3447_v24  ;;  %v1220_v24 = vld [vmem:[%s4877_s4 + $0xc0] sm:$0xff] }
 0x15e   : > { %v997_v50 = vmul.f32 0.5, %v965_v12  ;;  %v3750_v56 = vadd.f32 %v893_v63, %v738_v60  ;;  %v788_v63 = vpop.permute.xlu0 %787 }
 0x15f   : > { %1396 = vmatpush.msra.mxu0 %v1107_v7  ;;  %v3809_v60 = vadd.f32 %v793_v2, %v718_v13  ;;  %v1855_v7 = vld [vmem:[%s4879_s6 + $0x88] sm:$0xff] }
 0x160   : > { %2858 = vtanh.f32 %v997_v50  ;;  %v994_v61 = vmul.f32 0.5, %v3750_v56 }
 0x161   : > { %2860 = vtanh.f32 %v995_v52 }
 0x162   : > { %1927 = vperm.xlu0 %2823, %v1849_v5   ;;  %2862 = vtanh.f32 %v994_v61  ;;  %v528_v5 = vmul.f32 %v3503_v22, %v3311_v31  ;;  %v1219_v31 = vld [vmem:[%s4877_s4 + $0xb8] sm:$0xff] }
 0x163   : > { %1380 = vperm.xlu1 %2825, %v1226_v42   ;;  %v903_v16 = vpop.permute.xlu1 %902  ;;  %2864 = vtanh.f32 %v993_v34  ;;  %v974_v34 = vmul.f32 0.5, %v3809_v60 }
 0x164   : > { %v3768_v11 = vadd.f32 %v903_v16, %v740_v46  ;;  %v3820_v46 = vadd.f32 %v788_v63, %v717_v37  ;;  %v721_v16 = vadd.f32 %v689_v51, %v528_v5  ;;  %v1864_v37 = vld [vmem:[%s4879_s6 + $0xd0] sm:$0xff] }
 0x165   : > { %1375 = vperm.xlu2 %2827, %v1225_v17   ;;  %v803_v10 = vpop.permute.xlu2 %802 }
 0x166   : > { %v2859_v38 = vpop.eup %2858  ;;  %v996_v40 = vmul.f32 0.5, %v3768_v11  ;;  %v3798_v59 = vadd.f32 %v803_v10, %v720_v29 }
 0x167   : > { %v1061_v3 = vmul.f32 0.5, %v2859_v38  ;;  %v2861_v35 = vpop.eup %2860 }
 0x168   : > { %2866 = vtanh.f32 %v996_v40  ;;  %v2863_v18 = vpop.eup %2862  ;;  %v1059_v20 = vmul.f32 0.5, %v2861_v35  ;;  %v976_v4 = vmul.f32 0.5, %v3798_v59 }
 0x169   : > { %v1093_v19 = vadd.f32 0.5, %v1061_v3  ;;  %v2865_v0 = vpop.eup %2864  ;;  %v1058_v50 = vmul.f32 0.5, %v2863_v18  ;;  %v973_v3 = vmul.f32 0.5, %v3820_v46 }
 0x16a   : > { %1942 = vperm.xlu0 %2823, %v1852_v30   ;;  %v1091_v42 = vadd.f32 0.5, %v1059_v20  ;;  %v1057_v61 = vmul.f32 0.5, %v2865_v0  ;;  %v684_v20 = vmul.f32 %v3505_v6, %v3422_v9 }
 0x16b   : > { %1365 = vperm.xlu1 %2825, %v1223_v21   ;;  %v813_v54 = vpop.permute.xlu1 %812  ;;  %v1125_v26 = vmul.f32 %v1093_v19, %v965_v12  ;;  %v1090_v38 = vadd.f32 0.5, %v1058_v50 }
 0x16c   : > { %v3800_v41 = vadd.f32 %v813_v54, %v722_v45  ;;  %v1123_v32 = vmul.f32 %v1091_v42, %v3745_v62  ;;  %v1089_v40 = vadd.f32 0.5, %v1057_v61  ;;  %v1217_v62 = vld [vmem:[%s4877_s4 + $0xa8] sm:$0xff]  ;;  %v1838_v42 = vld [vmem:[%s4879_s6] sm:$0xff]  ;;  %v543_v61 = vmul.f32 %v3503_v22, %v3365_v49 }
 0x16d   : > { %1360 = vperm.xlu2 %2827, %v1222_v8   ;;  %v798_v58 = vpop.permute.xlu2 %797  ;;  %1507 = vmatpush.msra.mxu1 %v1125_v26  ;;  %v1122_v47 = vmul.f32 %v1090_v38, %v3750_v56  ;;  %v1216_v56 = vld [vmem:[%s4877_s4 + $0xa0] sm:$0xff]  ;;  %v1861_v26 = vld [vmem:[%s4879_s6 + $0xb8] sm:$0xff]  ;;  %v1867_v49 = vld [vmem:[%s4879_s6 + $0xe8] sm:$0xff] }
 0x16e   : > { %v2867_v55 = vpop.eup %2866  ;;  %v978_v28 = vmul.f32 0.5, %v3800_v41  ;;  %v3807_v12 = vadd.f32 %v798_v58, %v719_v53  ;;  %v1121_v1 = vmul.f32 %v1089_v40, %v3755_v27 }
 0x16f   : > { %v1060_v48 = vmul.f32 0.5, %v2867_v55  ;;  %v523_v55 = vmul.f32 %v3503_v22, %v3445_v23 }
 0x170   : > { %2868 = vtanh.f32 %v978_v28  ;;  %v975_v17 = vmul.f32 0.5, %v3807_v12 }
 0x171   : > { %v1092_v52 = vadd.f32 0.5, %v1060_v48  ;;  %2870 = vtanh.f32 %v976_v4  ;;  %v716_v5 = vadd.f32 %v684_v20, %v523_v55  ;;  %v1134_v20 = vld [vmem:[%s4876_s3 + $0x10] sm:$0xff] }
 0x172   : > { %1957 = vperm.xlu0 %2823, %v1855_v7   ;;  %2872 = vtanh.f32 %v975_v17  ;;  %v1839_v17 = vld [vmem:[%s4879_s6 + $0x8] sm:$0xff] }
 0x173   : > { %1350 = vperm.xlu1 %2825, %v1220_v24   ;;  %v808_v2 = vpop.permute.xlu1 %807  ;;  %v1124_v10 = vmul.f32 %v1092_v52, %v3768_v11  ;;  %2874 = vtanh.f32 %v974_v34  ;;  %v1858_v11 = vld [vmem:[%s4879_s6 + $0xa0] sm:$0xff]  ;;  %v704_v24 = vmul.f32 %v3505_v6, %v3434_v14 }
 0x174   : > { %v945_v25 = vadd.f32 %v808_v2, %v721_v16  ;;  %v540_v2 = vmul.f32 %v3503_v22, %v3351_v44 }
 0x175   : > { %1345 = vperm.xlu2 %2827, %v1219_v31   ;;  %1508 = vmatpush.msra.mxu1 %v1124_v10  ;;  %v736_v16 = vadd.f32 %v704_v24, %v543_v61 }
 0x176   : > { %v2869_v30 = vpop.eup %2868  ;;  %v977_v33 = vmul.f32 0.5, %v945_v25  ;;  %v3830_v57 = vpop.permute.xlu2 %624 }
 0x177   : > { %1509 = vmatpush.msra.mxu1 %v1123_v32  ;;  %v1042_v21 = vmul.f32 0.5, %v2869_v30  ;;  %v2871_v35 = vpop.eup %2870  ;;  %v4893_v32 = vld [vmem:[#allocation7_spill] sm:$0xff] }
 0x178   : > { %2876 = vtanh.f32 %v977_v33  ;;  %v2873_v29 = vpop.eup %2872  ;;  %v1040_v15 = vmul.f32 0.5, %v2871_v35  ;;  %v542_v40 = vmul.f32 %v3503_v22, %v4893_v32  ;;  %v1132_v35 = vld [vmem:[%s4876_s3] sm:$0xff]  ;;  %v1133_v32 = vld [vmem:[%s4876_s3 + $0x8] sm:$0xff] }
 0x179   : > { %1510 = vmatpush.msra.mxu1 %v1122_v47  ;;  %v1074_v19 = vadd.f32 0.5, %v1042_v21  ;;  %2878 = vtanh.f32 %v973_v3  ;;  %v2875_v8 = vpop.eup %2874  ;;  %v1039_v39 = vmul.f32 0.5, %v2873_v29  ;;  %v1842_v3 = vld [vmem:[%s4879_s6 + $0x20] sm:$0xff] }
 0x17a   : > { %1972 = vperm.xlu0 %2823, %v1858_v11   ;;  %v1072_v13 = vadd.f32 0.5, %v1040_v15  ;;  %v1038_v58 = vmul.f32 0.5, %v2875_v8  ;;  %v4894_v15 = vld [vmem:[#allocation8_spill] sm:$0xff] }
 0x17b   : > { %1335 = vperm.xlu1 %2825, %v1217_v62   ;;  %1511 = vmatpush.msra.mxu1 %v1121_v1  ;;  %v1106_v43 = vmul.f32 %v1074_v19, %v3800_v41  ;;  %v1214_v41 = vld [vmem:[%s4877_s4 + $0x90] sm:$0xff]  ;;  %v1071_v28 = vadd.f32 0.5, %v1039_v39  ;;  %v2416_v19 = vld [vmem:[%s4880_s7] sm:$0xff] }
 0x17c   : > { %v633_v45 = vpop.permute.xlu1 %632  ;;  %v1104_v48 = vmul.f32 %v1072_v13, %v3798_v59  ;;  %v1070_v50 = vadd.f32 0.5, %v1038_v58  ;;  %v2419_v58 = vld [vmem:[%s4880_s7 + $0x18] sm:$0xff] }
 0x17d   : > { %1330 = vperm.xlu2 %2827, %v1216_v56   ;;  %1397 = vmatpush.msra.mxu0 %v1106_v43  ;;  %v1103_v23 = vmul.f32 %v1071_v28, %v3807_v12  ;;  %v703_v10 = vmul.f32 %v3505_v6, %v633_v45  ;;  %v1844_v45 = vld [vmem:[%s4879_s6 + $0x30] sm:$0xff]  ;;  %v1847_v28 = vld [vmem:[%s4879_s6 + $0x48] sm:$0xff] }
 0x17e   : > { %v2877_v54 = vpop.eup %2876  ;;  %v3844_v27 = vpop.permute.xlu2 %620  ;;  %v1102_v59 = vmul.f32 %v1070_v50, %v3809_v60  ;;  %v701_v60 = vmul.f32 %v3505_v6, %v3830_v57  ;;  %v1848_v50 = vld [vmem:[%s4879_s6 + $0x50] sm:$0xff] }
 0x17f   : > { %v1041_v18 = vmul.f32 0.5, %v2877_v54  ;;  %v2879_v53 = vpop.eup %2878  ;;  %v735_v33 = vadd.f32 %v703_v10, %v542_v40  ;;  %v868_v57 = vpop.permute.xlu0 %867  ;;  %v541_v54 = vmul.f32 %v3503_v22, %v4894_v15  ;;  %v2428_v40 = vld [vmem:[%s4880_s7 + $0x60] sm:$0xff] }
 0x180   : > { %v1037_v63 = vmul.f32 0.5, %v2879_v53  ;;  %v733_v30 = vadd.f32 %v701_v60, %v540_v2  ;;  %v2425_v60 = vld [vmem:[%s4880_s7 + $0x48] sm:$0xff]  ;;  %v1853_v2 = vld [vmem:[%s4879_s6 + $0x78] sm:$0xff]  ;;  %v1866_v15 = vld [vmem:[%s4879_s6 + $0xe0] sm:$0xff] }
 0x181   : > { %v1073_v0 = vadd.f32 0.5, %v1041_v18 }
 0x182   : > { %1987 = vperm.xlu0 %2823, %v1861_v26   ;;  %v1069_v4 = vadd.f32 0.5, %v1037_v63  ;;  %v3892_v62 = vadd.f32 %v868_v57, %v733_v30  ;;  %v1845_v26 = vld [vmem:[%s4879_s6 + $0x38] sm:$0xff]  ;;  %v1140_v30 = vld [vmem:[%s4876_s3 + $0x40] sm:$0xff] }
 0x183   : > { %1320 = vperm.xlu1 %2825, %v1214_v41   ;;  %v1105_v51 = vmul.f32 %v1073_v0, %v945_v25  ;;  %v2431_v57 = vld [vmem:[%s4880_s7 + $0x78] sm:$0xff] }
 0x184   : > { %v629_v7 = vpop.permute.xlu1 %628  ;;  %v1101_v14 = vmul.f32 %v1069_v4, %v3820_v46  ;;  %v1841_v46 = vld [vmem:[%s4879_s6 + $0x18] sm:$0xff]  ;;  %v989_v18 = vmul.f32 0.5, %v3892_v62  ;;  %v1136_v4 = vld [vmem:[%s4876_s3 + $0x20] sm:$0xff] }
 0x185   : > { %1315 = vperm.xlu2 %2827, %v1213_v36   ;;  %1398 = vmatpush.msra.mxu0 %v1105_v51  ;;  %v702_v43 = vmul.f32 %v3505_v6, %v629_v7  ;;  %v700_v36 = vmul.f32 %v3505_v6, %v3844_v27  ;;  %v4895_v7 = vld [vmem:[#allocation6_spill] sm:$0xff] }
 0x187   : > { %v783_v9 = vpop.permute.xlu2 %782  ;;  %1399 = vmatpush.msra.mxu0 %v1104_v48  ;;  %v734_v53 = vadd.f32 %v702_v43, %v541_v54  ;;  %v539_v48 = vmul.f32 %v3503_v22, %v4895_v7  ;;  %v2422_v22 = vld [vmem:[%s4880_s7 + $0x30] sm:$0xff]  ;;  %v1139_v43 = vld [vmem:[%s4876_s3 + $0x38] sm:$0xff]  ;;  %v1141_v54 = vld [vmem:[%s4876_s3 + $0x48] sm:$0xff] }
 0x188   : > { %v940_v52 = vadd.f32 %v783_v9, %v716_v5  ;;  %v1147_v7 = vld [vmem:[%s4876_s3 + $0x78] sm:$0xff] }
 0x189   : > { %1400 = vmatpush.msra.mxu0 %v1103_v23  ;;  %v732_v6 = vadd.f32 %v700_v36, %v539_v48  ;;  %v2446_v36 = vld [vmem:[%s4880_s7 + $0xf0] sm:$0xff] }
 0x18a   : > { %v972_v12 = vmul.f32 0.5, %v940_v52  ;;  %2002 = vperm.xlu0 %2823, %v1864_v37   ;;  %v1154_v48 = vld [vmem:[%s4876_s3 + $0xb0] sm:$0xff] }
 0x18b   : > { %1872 = vperm.xlu1 %2825, %v1838_v42   ;;  %1401 = vmatpush.msra.mxu0 %v1102_v59  ;;  %v1850_v59 = vld [vmem:[%s4879_s6 + $0x60] sm:$0xff] }
 0x18c   : > { %2880 = vtanh.f32 %v972_v12  ;;  %v1851_v12 = vld [vmem:[%s4879_s6 + $0x68] sm:$0xff] }
 0x18d   : > { %v883_v31 = vpop.permute.xlu1 %882  ;;  %1877 = vperm.xlu2 %2827, %v1839_v17   ;;  %1402 = vmatpush.msra.mxu0 %v1101_v14 }
 0x18e   : > { %v960_v34 = vadd.f32 %v883_v31, %v736_v16 }
 0x190   : > { %v992_v38 = vmul.f32 0.5, %v960_v34 }
 0x192   : > { %v2881_v25 = vpop.eup %2880  ;;  %2882 = vtanh.f32 %v992_v38  ;;  %2017 = vperm.xlu0 %2823, %v1867_v49   ;;  %v1854_v38 = vld [vmem:[%s4879_s6 + $0x80] sm:$0xff] }
 0x193   : > { %1887 = vperm.xlu1 %2825, %v1841_v46   ;;  %v1036_v44 = vmul.f32 0.5, %v2881_v25 }
 0x195   : > { %v878_v47 = vpop.permute.xlu1 %877  ;;  %1892 = vperm.xlu2 %2827, %v1842_v3   ;;  %v1068_v11 = vadd.f32 0.5, %v1036_v44  ;;  %v1856_v3 = vld [vmem:[%s4879_s6 + $0x90] sm:$0xff]  ;;  %v1857_v44 = vld [vmem:[%s4879_s6 + $0x98] sm:$0xff] }
 0x196   : > { %v959_v21 = vadd.f32 %v878_v47, %v735_v33  ;;  %v1135_v33 = vld [vmem:[%s4876_s3 + $0x18] sm:$0xff]  ;;  %v1142_v47 = vld [vmem:[%s4876_s3 + $0x50] sm:$0xff] }
 0x197   : > { %v1100_v1 = vmul.f32 %v1068_v11, %v940_v52  ;;  %v1859_v11 = vld [vmem:[%s4879_s6 + $0xa8] sm:$0xff] }
 0x198   : > { %v2883_v56 = vpop.eup %2882  ;;  %v991_v29 = vmul.f32 0.5, %v959_v21 }
 0x199   : > { %1403 = vmatpush.msra.mxu0 %v1100_v1  ;;  %v1056_v8 = vmul.f32 0.5, %v2883_v56  ;;  %v2434_v1 = vld [vmem:[%s4880_s7 + $0x90] sm:$0xff]  ;;  %v1863_v56 = vld [vmem:[%s4879_s6 + $0xc8] sm:$0xff] }
 0x19a   : > { %2884 = vtanh.f32 %v991_v29  ;;  %2450 = vperm.xlu0 %2823, %v2416_v19   ;;  %1404 = vmatmul.f32.vlgmr.msra.gmra.mxu0 %v1132_v35  ;;  %v1144_v19 = vld [vmem:[%s4876_s3 + $0x60] sm:$0xff]  ;;  %v2437_v29 = vld [vmem:[%s4880_s7 + $0xa8] sm:$0xff] }
 0x19b   : > { %1902 = vperm.xlu1 %2825, %v1844_v45   ;;  %v1088_v39 = vadd.f32 0.5, %v1056_v8  ;;  %2886 = vtanh.f32 %v989_v18  ;;  %v1862_v35 = vld [vmem:[%s4879_s6 + $0xc0] sm:$0xff]  ;;  %v1146_v45 = vld [vmem:[%s4876_s3 + $0x70] sm:$0xff]  ;;  %v1865_v8 = vld [vmem:[%s4879_s6 + $0xd8] sm:$0xff] }
 0x19c   : > { %v1148_v18 = vld [vmem:[%s4876_s3 + $0x80] sm:$0xff] }
 0x19d   : > { %v873_v41 = vpop.permute.xlu1 %872  ;;  %1907 = vperm.xlu2 %2827, %v1845_v26   ;;  %v1120_v0 = vmul.f32 %v1088_v39, %v960_v34  ;;  %v1138_v34 = vld [vmem:[%s4876_s3 + $0x30] sm:$0xff]  ;;  %v2440_v26 = vld [vmem:[%s4880_s7 + $0xc0] sm:$0xff] }
 0x19e   : > { %v958_v13 = vadd.f32 %v873_v41, %v734_v53  ;;  %v1868_v39 = vld [vmem:[%s4879_s6 + $0xf0] sm:$0xff]  ;;  %v1869_v53 = vld [vmem:[%s4879_s6 + $0xf8] sm:$0xff] }
 0x19f   : > { %1512 = vmatpush.msra.mxu1 %v1120_v0  ;;  %v1143_v41 = vld [vmem:[%s4876_s3 + $0x58] sm:$0xff] }
 0x1a0   : > { %v2885_v55 = vpop.eup %2884  ;;  %v990_v51 = vmul.f32 0.5, %v958_v13  ;;  %v2443_v0 = vld [vmem:[%s4880_s7 + $0xd8] sm:$0xff] }
 0x1a1   : > { %v1055_v63 = vmul.f32 0.5, %v2885_v55  ;;  %v2887_v9 = vpop.eup %2886  ;;  %v1145_v55 = vld [vmem:[%s4876_s3 + $0x68] sm:$0xff] }
 0x1a2   : > { %2888 = vtanh.f32 %v990_v51  ;;  %2465 = vperm.xlu0 %2823, %v2419_v58   ;;  %1407 = vmatmul.f32.gmra.mxu0 %v1134_v20  ;;  %v1053_v24 = vmul.f32 0.5, %v2887_v9  ;;  %v2417_v58 = vld [vmem:[%s4880_s7 + $0x8] sm:$0xff]  ;;  %v2418_v20 = vld [vmem:[%s4880_s7 + $0x10] sm:$0xff]  ;;  %v1152_v51 = vld [vmem:[%s4876_s3 + $0xa0] sm:$0xff] }
 0x1a3   : > { %1917 = vperm.xlu1 %2825, %v1847_v28   ;;  %v1087_v5 = vadd.f32 0.5, %v1055_v63  ;;  %v2420_v28 = vld [vmem:[%s4880_s7 + $0x20] sm:$0xff]  ;;  %v2421_v63 = vld [vmem:[%s4880_s7 + $0x28] sm:$0xff] }
 0x1a4   : > { %v1085_v14 = vadd.f32 0.5, %v1053_v24  ;;  %v1149_v9 = vld [vmem:[%s4876_s3 + $0x88] sm:$0xff]  ;;  %v2430_v24 = vld [vmem:[%s4880_s7 + $0x70] sm:$0xff] }
 0x1a5   : > { %v863_v27 = vpop.permute.xlu1 %862  ;;  %1922 = vperm.xlu2 %2827, %v1848_v50   ;;  %v1119_v23 = vmul.f32 %v1087_v5, %v959_v21  ;;  %v1860_v21 = vld [vmem:[%s4879_s6 + $0xb0] sm:$0xff]  ;;  %v2423_v50 = vld [vmem:[%s4880_s7 + $0x38] sm:$0xff]  ;;  %v2424_v5 = vld [vmem:[%s4880_s7 + $0x40] sm:$0xff] }
 0x1a6   : > { %v956_v37 = vadd.f32 %v863_v27, %v732_v6  ;;  %v1117_v31 = vmul.f32 %v1085_v14, %v3892_v62  ;;  %v1137_v62 = vld [vmem:[%s4876_s3 + $0x28] sm:$0xff]  ;;  %v1156_v6 = vld [vmem:[%s4876_s3 + $0xc0] sm:$0xff]  ;;  %v2426_v27 = vld [vmem:[%s4880_s7 + $0x50] sm:$0xff] }
 0x1a7   : > { %1513 = vmatpush.msra.mxu1 %v1119_v23  ;;  %v2427_v23 = vld [vmem:[%s4880_s7 + $0x58] sm:$0xff] }
 0x1a8   : > { %v2889_v52 = vpop.eup %2888  ;;  %v988_v42 = vmul.f32 0.5, %v956_v37  ;;  %v2435_v14 = vld [vmem:[%s4880_s7 + $0x98] sm:$0xff] }
 0x1a9   : > { %v1054_v61 = vmul.f32 0.5, %v2889_v52  ;;  %v1153_v52 = vld [vmem:[%s4876_s3 + $0xa8] sm:$0xff] }
 0x1aa   : > { %2890 = vtanh.f32 %v988_v42  ;;  %2480 = vperm.xlu0 %2823, %v2422_v22   ;;  %1410 = vmatmul.f32.gmra.mxu0 %v1136_v4  ;;  %v1158_v22 = vld [vmem:[%s4876_s3 + $0xd0] sm:$0xff]  ;;  %v2429_v4 = vld [vmem:[%s4880_s7 + $0x68] sm:$0xff]  ;;  %v1160_v42 = vld [vmem:[%s4876_s3 + $0xe0] sm:$0xff] }
 0x1ab   : > { %1932 = vperm.xlu1 %2825, %v1850_v59   ;;  %v1086_v17 = vadd.f32 0.5, %v1054_v61  ;;  %v2432_v59 = vld [vmem:[%s4880_s7 + $0x80] sm:$0xff]  ;;  %v2433_v61 = vld [vmem:[%s4880_s7 + $0x88] sm:$0xff] }
 0x1ad   : > { %1937 = vperm.xlu2 %2827, %v1851_v12   ;;  %v1118_v16 = vmul.f32 %v1086_v17, %v958_v13  ;;  %v1150_v13 = vld [vmem:[%s4876_s3 + $0x90] sm:$0xff]  ;;  %v1155_v12 = vld [vmem:[%s4876_s3 + $0xb8] sm:$0xff] }
 0x1ae   : > { %v1162_v17 = vld [vmem:[%s4876_s3 + $0xf0] sm:$0xff] }
 0x1af   : > { %1514 = vmatpush.msra.mxu1 %v1118_v16  ;;  %v2436_v16 = vld [vmem:[%s4880_s7 + $0xa0] sm:$0xff] }
 0x1b0   : > { %v2891_v49 = vpop.eup %2890 }
 0x1b1   : > { %1515 = vmatpush.msra.mxu1 %v1117_v31  ;;  %v1052_v10 = vmul.f32 0.5, %v2891_v49  ;;  %v1157_v31 = vld [vmem:[%s4876_s3 + $0xc8] sm:$0xff]  ;;  %v2438_v49 = vld [vmem:[%s4880_s7 + $0xb0] sm:$0xff] }
 0x1b2   : > { %2495 = vperm.xlu0 %2823, %v2425_v60   ;;  %1413 = vmatmul.f32.gmra.mxu0 %v1138_v34  ;;  %v1164_v34 = vld [vmem:[%s4876_s3 + $0x100] sm:$0xff] }
 0x1b3   : > { %1947 = vperm.xlu1 %2825, %v1853_v2   ;;  %v1084_v46 = vadd.f32 0.5, %v1052_v10  ;;  %v2439_v2 = vld [vmem:[%s4880_s7 + $0xb8] sm:$0xff] }
 0x1b4   : > { %v1159_v10 = vld [vmem:[%s4876_s3 + $0xd8] sm:$0xff] }
 0x1b5   : > { %1952 = vperm.xlu2 %2827, %v1854_v38   ;;  %v1116_v25 = vmul.f32 %v1084_v46, %v956_v37  ;;  %v1151_v37 = vld [vmem:[%s4876_s3 + $0x98] sm:$0xff]  ;;  %v1166_v46 = vld [vmem:[%s4876_s3 + $0x110] sm:$0xff] }
 0x1b7   : > { %1516 = vmatpush.msra.mxu1 %v1116_v25  ;;  %v2441_v25 = vld [vmem:[%s4880_s7 + $0xc8] sm:$0xff] }
 0x1b8   : > { %1517 = vmatmul.f32.vlgmr.msra.gmra.mxu1 %v1133_v32  ;;  %v2442_v32 = vld [vmem:[%s4880_s7 + $0xd0] sm:$0xff] }
 0x1ba   : > { %2510 = vperm.xlu0 %2823, %v2428_v40   ;;  %1416 = vmatmul.f32.gmra.mxu0 %v1140_v30  ;;  %v1161_v40 = vld [vmem:[%s4876_s3 + $0xe8] sm:$0xff] }
 0x1bb   : > { %1962 = vperm.xlu1 %2825, %v1856_v3   ;;  %v1168_v3 = vld [vmem:[%s4876_s3 + $0x120] sm:$0xff] }
 0x1bd   : > { %1967 = vperm.xlu2 %2827, %v1857_v44   ;;  %v2444_v44 = vld [vmem:[%s4880_s7 + $0xe0] sm:$0xff] }
 0x1c0   : > { %1520 = vmatmul.f32.gmra.mxu1 %v1135_v33  ;;  %v2445_v33 = vld [vmem:[%s4880_s7 + $0xe8] sm:$0xff] }
 0x1c2   : > { %2525 = vperm.xlu0 %2823, %v2431_v57   ;;  %1419 = vmatmul.f32.gmra.mxu0 %v1142_v47  ;;  %v1163_v57 = vld [vmem:[%s4876_s3 + $0xf8] sm:$0xff] }
 0x1c3   : > { %1977 = vperm.xlu1 %2825, %v1859_v11   ;;  %v1170_v11 = vld [vmem:[%s4876_s3 + $0x130] sm:$0xff] }
 0x1c5   : > { %1982 = vperm.xlu2 %2827, %v1860_v21   ;;  %v2447_v21 = vld [vmem:[%s4880_s7 + $0xf8] sm:$0xff] }
 0x1c8   : > { %1523 = vmatmul.f32.gmra.mxu1 %v1137_v62  ;;  %v2677_v62 = vld [vmem:[#allocation2] sm:$0x1] }
 0x1ca   : > { %2540 = vperm.xlu0 %2823, %v2434_v1   ;;  %1422 = vmatmul.f32.gmra.mxu0 %v1144_v19  ;;  %v1165_v19 = vld [vmem:[%s4876_s3 + $0x108] sm:$0xff] }
 0x1cb   : > { %1992 = vperm.xlu1 %2825, %v1862_v35  }
 0x1cd   : > { %1997 = vperm.xlu2 %2827, %v1863_v56   ;;  %v1172_v56 = vld [vmem:[%s4876_s3 + $0x140] sm:$0xff] }
 0x1d0   : > { %1526 = vmatmul.f32.gmra.mxu1 %v1139_v43 }
 0x1d2   : > { %2555 = vperm.xlu0 %2823, %v2437_v29   ;;  %1425 = vmatmul.f32.gmra.mxu0 %v1146_v45  ;;  %v1167_v29 = vld [vmem:[%s4876_s3 + $0x118] sm:$0xff] }
 0x1d3   : > { %2007 = vperm.xlu1 %2825, %v1865_v8   ;;  %v1174_v8 = vld [vmem:[%s4876_s3 + $0x150] sm:$0xff] }
 0x1d5   : > { %2012 = vperm.xlu2 %2827, %v1866_v15  }
 0x1d8   : > { %1529 = vmatmul.f32.gmra.mxu1 %v1141_v54  ;;  %v1169_v54 = vld [vmem:[%s4876_s3 + $0x128] sm:$0xff] }
 0x1da   : > { %2570 = vperm.xlu0 %2823, %v2440_v26   ;;  %1428 = vmatmul.f32.gmra.mxu0 %v1148_v18  ;;  %v1176_v18 = vld [vmem:[%s4876_s3 + $0x160] sm:$0xff] }
 0x1db   : > { %2022 = vperm.xlu1 %2825, %v1868_v39  }
 0x1dd   : > { %2027 = vperm.xlu2 %2827, %v1869_v53   ;;  %v1171_v53 = vld [vmem:[%s4876_s3 + $0x138] sm:$0xff] }
 0x1e0   : > { %1532 = vmatmul.f32.gmra.mxu1 %v1143_v41  ;;  %v4204_v41 = vpop.permute.xlu0 %1235 }
 0x1e2   : > { %2585 = vperm.xlu0 %2823, %v2443_v0   ;;  %1431 = vmatmul.f32.gmra.mxu0 %v1150_v13  ;;  %v1178_v13 = vld [vmem:[%s4876_s3 + $0x170] sm:$0xff] }
 0x1e3   : > { %2455 = vperm.xlu1 %2825, %v2417_v58  }
 0x1e5   : > { %2460 = vperm.xlu2 %2827, %v2418_v20   ;;  %v1173_v20 = vld [vmem:[%s4876_s3 + $0x148] sm:$0xff] }
 0x1e8   : > { %1535 = vmatmul.f32.gmra.mxu1 %v1145_v55  ;;  %v4216_v55 = vpop.permute.xlu2 %1230 }
 0x1ea   : > { %2600 = vperm.xlu0 %2823, %v2446_v36   ;;  %1434 = vmatmul.f32.gmra.mxu0 %v1152_v51  ;;  %v1180_v51 = vld [vmem:[%s4876_s3 + $0x180] sm:$0xff] }
 0x1eb   : > { %2470 = vperm.xlu1 %2825, %v2420_v28   ;;  %v4221_v28 = vpop.permute.xlu0 %1250 }
 0x1ed   : > { %2475 = vperm.xlu2 %2827, %v2421_v63  }
 0x1f0   : > { %1538 = vmatmul.f32.gmra.mxu1 %v1147_v7  ;;  %v1175_v7 = vld [vmem:[%s4876_s3 + $0x158] sm:$0xff] }
 0x1f2   : > { %1437 = vmatmul.f32.gmra.mxu0 %v1154_v48  ;;  %v4228_v48 = vpop.permute.xlu1 %1240 }
 0x1f3   : > { %2485 = vperm.xlu1 %2825, %v2423_v50  }
 0x1f5   : > { %2490 = vperm.xlu2 %2827, %v2424_v5   ;;  %v1182_v5 = vld [vmem:[%s4876_s3 + $0x190] sm:$0xff] }
 0x1f8   : > { %1541 = vmatmul.f32.gmra.mxu1 %v1149_v9  ;;  %v4235_v9 = vpop.permute.xlu2 %1245 }
 0x1fa   : > { %1440 = vmatmul.f32.gmra.mxu0 %v1156_v6  ;;  %v4237_v6 = vpop.permute.xlu0 %1265 }
 0x1fb   : > { %2500 = vperm.xlu1 %2825, %v2426_v27  }
 0x1fd   : > { %2505 = vperm.xlu2 %2827, %v2427_v23   ;;  %v1177_v23 = vld [vmem:[%s4876_s3 + $0x168] sm:$0xff] }
 0x200   : > { %1544 = vmatmul.f32.gmra.mxu1 %v1151_v37 }
 0x202   : > { %1443 = vmatmul.f32.gmra.mxu0 %v1158_v22  ;;  %v1184_v22 = vld [vmem:[%s4876_s3 + $0x1a0] sm:$0xff] }
 0x203   : > { %2515 = vperm.xlu1 %2825, %v2429_v4   ;;  %v4249_v4 = vpop.permute.xlu1 %1255 }
 0x205   : > { %2520 = vperm.xlu2 %2827, %v2430_v24   ;;  %v4251_v24 = vpop.permute.xlu2 %1260 }
 0x208   : > { %1547 = vmatmul.f32.gmra.mxu1 %v1153_v52  ;;  %v4253_v52 = vpop.permute.xlu0 %1280 }
 0x20a   : > { %1446 = vmatmul.f32.gmra.mxu0 %v1160_v42 }
 0x20b   : > { %2530 = vperm.xlu1 %2825, %v2432_v59   ;;  %v1179_v59 = vld [vmem:[%s4876_s3 + $0x178] sm:$0xff] }
 0x20d   : > { %2535 = vperm.xlu2 %2827, %v2433_v61  }
 0x210   : > { %1550 = vmatmul.f32.gmra.mxu1 %v1155_v12  ;;  %v1186_v12 = vld [vmem:[%s4876_s3 + $0x1b0] sm:$0xff] }
 0x212   : > { %1449 = vmatmul.f32.gmra.mxu0 %v1162_v17  ;;  %v1271_v17 = vpop.permute.xlu1 %1270 }
 0x213   : > { %2545 = vperm.xlu1 %2825, %v2435_v14  }
 0x215   : > { %2550 = vperm.xlu2 %2827, %v2436_v16   ;;  %v4265_v16 = vpop.permute.xlu2 %1275 }
 0x217   : > { %v4119_v60 = vpop.f32.mrf.mxu0 }
 0x218   : > { %1553 = vmatmul.f32.gmra.mxu1 %v1157_v31 }
 0x21a   : > { %1452 = vmatmul.f32.gmra.mxu0 %v1164_v34  ;;  %v1181_v34 = vld [vmem:[%s4876_s3 + $0x188] sm:$0xff] }
 0x21b   : > { %2560 = vperm.xlu1 %2825, %v2438_v49  }
 0x21d   : > { %2565 = vperm.xlu2 %2827, %v2439_v2   ;;  %v1306_v2 = vpop.permute.xlu0 %1305 }
 0x21f   : > { %v4133_v38 = vpop.f32.mrf.mxu0 }
 0x220   : > { %1556 = vmatmul.f32.gmra.mxu1 %v1159_v10 }
 0x222   : > { %1455 = vmatmul.f32.gmra.mxu0 %v1166_v46  ;;  %v1188_v46 = vld [vmem:[%s4876_s3 + $0x1c0] sm:$0xff] }
 0x223   : > { %2575 = vperm.xlu1 %2825, %v2441_v25  }
 0x225   : > { %2580 = vperm.xlu2 %2827, %v2442_v32   ;;  %v1183_v32 = vld [vmem:[%s4876_s3 + $0x198] sm:$0xff] }
 0x227   : > { %v4147_v30 = vpop.f32.mrf.mxu0 }
 0x228   : > { %1559 = vmatmul.f32.gmra.mxu1 %v1161_v40  ;;  %v1291_v40 = vpop.permute.xlu2 %1290 }
 0x22a   : > { %1458 = vmatmul.f32.gmra.mxu0 %v1168_v3 }
 0x22b   : > { %2590 = vperm.xlu1 %2825, %v2444_v44   ;;  %v1190_v44 = vld [vmem:[%s4876_s3 + $0x1d0] sm:$0xff] }
 0x22d   : > { %2595 = vperm.xlu2 %2827, %v2445_v33   ;;  %v1296_v33 = vpop.permute.xlu0 %1295 }
 0x22f   : > { %v4161_v47 = vpop.f32.mrf.mxu0 }
 0x230   : > { %1562 = vmatmul.f32.gmra.mxu1 %v1163_v57 }
 0x232   : > { %1461 = vmatmul.f32.gmra.mxu0 %v1170_v11  ;;  %v1185_v11 = vld [vmem:[%s4876_s3 + $0x1a8] sm:$0xff] }
 0x233   : > { %2605 = vperm.xlu1 %2825, %v2447_v21   ;;  %v1286_v21 = vpop.permute.xlu1 %1285 }
 0x235   : > { %2680 = vperm.xlu2 %2827, %v2677_v62   ;;  %v4169_v1 = vpop.f32.mrf.mxu1 }
 0x237   : > { %v4174_v35 = vpop.f32.mrf.mxu0 }
 0x238   : > { %1565 = vmatmul.f32.gmra.mxu1 %v1165_v19  ;;  %v1192_v19 = vld [vmem:[%s4876_s3 + $0x1e0] sm:$0xff] }
 0x23a   : > { %1464 = vmatmul.f32.gmra.mxu0 %v1172_v56  ;;  %v4289_v56 = vpop.permute.xlu2 %1385 }
 0x23d   : > { %v4179_v43 = vpop.f32.mrf.mxu1 }
 0x23f   : > { %v4184_v45 = vpop.f32.mrf.mxu0 }
 0x240   : > { %1568 = vmatmul.f32.gmra.mxu1 %v1167_v29  ;;  %v4291_v29 = vpop.permute.xlu0 %1370 }
 0x242   : > { %1467 = vmatmul.f32.gmra.mxu0 %v1174_v8 }
 0x245   : > { %v4189_v15 = vpop.f32.mrf.mxu1 }
 0x247   : > { %v4194_v26 = vpop.f32.mrf.mxu0 }
 0x248   : > { %1571 = vmatmul.f32.gmra.mxu1 %v1169_v54  ;;  %v1187_v54 = vld [vmem:[%s4876_s3 + $0x1b8] sm:$0xff] }
 0x24a   : > { %1470 = vmatmul.f32.gmra.mxu0 %v1176_v18 }
 0x24d   : > { %v4199_v39 = vpop.f32.mrf.mxu1 }
 0x24f   : > { %v4206_v0 = vpop.f32.mrf.mxu0 }
 0x250   : > { %1574 = vmatmul.f32.gmra.mxu1 %v1171_v53  ;;  %v1194_v53 = vld [vmem:[%s4876_s3 + $0x1f0] sm:$0xff] }
 0x252   : > { %1473 = vmatmul.f32.gmra.mxu0 %v1178_v13  ;;  %v1301_v13 = vpop.permute.xlu1 %1300 }
 0x255   : > { %v4211_v58 = vpop.f32.mrf.mxu1 }
 0x257   : > { %v1429_v36 = vpop.f32.mrf.mxu0 }
 0x258   : > { %1577 = vmatmul.f32.gmra.mxu1 %v1173_v20  ;;  %v1430_v14 = vadd.f32 %v1429_v36, %v1271_v17  ;;  %v4299_v20 = vpop.permute.xlu2 %1375  ;;  %v4301_v36 = vpop.permute.xlu0 %1355 }
 0x259   : > { %4896 = vst [vmem:[#allocation7_spill] sm:$0xff] %v4301_v36 }
 0x25a   : > { %1476 = vmatmul.f32.gmra.mxu0 %v1180_v51 }
 0x25d   : > { %v4223_v63 = vpop.f32.mrf.mxu1 }
 0x25f   : > { %v4230_v50 = vpop.f32.mrf.mxu0 }
 0x260   : > { %1580 = vmatmul.f32.gmra.mxu1 %v1175_v7  ;;  %v1189_v7 = vld [vmem:[%s4876_s3 + $0x1c8] sm:$0xff]  ;;  %v4313_v17 = vpop.permute.xlu0 %1340 }
 0x262   : > { %1479 = vmatmul.f32.gmra.mxu0 %v1182_v5 }
 0x265   : > { %v4239_v27 = vpop.f32.mrf.mxu1 }
 0x267   : > { %v4244_v37 = vpop.f32.mrf.mxu0 }
 0x268   : > { %1583 = vmatmul.f32.gmra.mxu1 %v1177_v23  ;;  %v4306_v23 = vpop.permute.xlu1 %1380 }
 0x26a   : > { %1482 = vmatmul.f32.gmra.mxu0 %v1184_v22  ;;  %v4308_v22 = vpop.permute.xlu2 %1360 }
 0x26d   : > { %v4255_v42 = vpop.f32.mrf.mxu1 }
 0x26f   : > { %v4260_v61 = vpop.f32.mrf.mxu0 }
 0x270   : > { %1586 = vmatmul.f32.gmra.mxu1 %v1179_v59 }
 0x272   : > { %1485 = vmatmul.f32.gmra.mxu0 %v1186_v12  ;;  %v1191_v12 = vld [vmem:[%s4876_s3 + $0x1d8] sm:$0xff] }
 0x275   : > { %v1542_v31 = vpop.f32.mrf.mxu1 }
 0x276   : > { %v4270_v49 = vadd.f32 %v1542_v31, %v1430_v14 }
 0x277   : > { %v1441_v10 = vpop.f32.mrf.mxu0 }
 0x278   : > { %1589 = vmatmul.f32.gmra.mxu1 %v1181_v34  ;;  %v4317_v34 = vpop.permute.xlu1 %1365 }
 0x27a   : > { %1488 = vmatmul.f32.gmra.mxu0 %v1188_v46 }
 0x27d   : > { %v4275_v25 = vpop.f32.mrf.mxu1 }
 0x27f   : > { %v1444_v3 = vpop.f32.mrf.mxu0 }
 0x280   : > { %1592 = vmatmul.f32.gmra.mxu1 %v1183_v32  ;;  %v1193_v32 = vld [vmem:[%s4876_s3 + $0x1e8] sm:$0xff] }
 0x282   : > { %1491 = vmatmul.f32.gmra.mxu0 %v1190_v44  ;;  %v1445_v44 = vadd.f32 %v1444_v3, %v1296_v33  ;;  %v1436_v3 = vadd.f32 %v4244_v37, %v4253_v52  ;;  %v4349_v37 = vpop.permute.xlu1 %1350 }
 0x285   : > { %v1548_v57 = vpop.f32.mrf.mxu1 }
 0x287   : > { %v1447_v62 = vpop.f32.mrf.mxu0 }
 0x288   : > { %1595 = vmatmul.f32.gmra.mxu1 %v1185_v11  ;;  %v1448_v31 = vadd.f32 %v1447_v62, %v1301_v13  ;;  %v1439_v13 = vadd.f32 %v4260_v61, %v1286_v21  ;;  %v1433_v61 = vadd.f32 %v4230_v50, %v4265_v16  ;;  %v4347_v21 = vadd.f32 %v1548_v57, %v1436_v3 }
 0x289   : > { %v1427_v50 = vadd.f32 %v4206_v0, %v4237_v6  ;;  %v1421_v3 = vadd.f32 %v4184_v45, %v4249_v4 }
 0x28a   : > { %1494 = vmatmul.f32.gmra.mxu0 %v1192_v19  ;;  %v4324_v19 = vpop.permute.xlu2 %1345  ;;  %v4352_v52 = vadd.f32 %v4275_v25, %v1433_v61  ;;  %v1624_v16 = vmul.f32 0.5, %v4347_v21  ;;  %v1424_v25 = vadd.f32 %v4194_v26, %v4251_v24  ;;  %v4382_v4 = vpop.permute.xlu1 %1335 }
 0x28c   : > { %v4371_v6 = vadd.f32 %v4239_v27, %v1424_v25 }
 0x28d   : > { %v1551_v8 = vpop.f32.mrf.mxu1 }
 0x28e   : > { %v4338_v33 = vadd.f32 %v1551_v8, %v1439_v13 }
 0x28f   : > { %v1450_v18 = vpop.f32.mrf.mxu0 }
 0x290   : > { %1598 = vmatmul.f32.gmra.mxu1 %v1187_v54  ;;  %v1442_v54 = vadd.f32 %v1441_v10, %v1291_v40 }
 0x292   : > { %1497 = vmatmul.f32.gmra.mxu0 %v1194_v53 }
 0x295   : > { %v1554_v51 = vpop.f32.mrf.mxu1 }
 0x296   : > { %v4332_v62 = vadd.f32 %v1554_v51, %v1442_v54  ;;  %v1195_v51 = vld [vmem:[%s4876_s3 + $0x1f8] sm:$0xff]  ;;  %v1623_v54 = vmul.f32 0.5, %v4352_v52 }
 0x297   : > { %v1453_v5 = vpop.f32.mrf.mxu0 }
 0x298   : > { %1601 = vmatmul.f32.gmra.mxu1 %v1189_v7  ;;  %v1626_v40 = vmul.f32 0.5, %v4332_v62 }
 0x29d   : > { %v1557_v59 = vpop.f32.mrf.mxu1 }
 0x29e   : > { %v4328_v7 = vadd.f32 %v1557_v59, %v1445_v44  ;;  %v4365_v44 = vadd.f32 %v4255_v42, %v1427_v50  ;;  %v1620_v50 = vmul.f32 0.5, %v4371_v6 }
 0x29f   : > { %v4315_v14 = vpop.f32.mrf.mxu0 }
 0x2a0   : > { %1604 = vmatmul.f32.gmra.mxu1 %v1191_v12  ;;  %v4330_v12 = vpop.permute.xlu0 %1325  ;;  %v1627_v10 = vmul.f32 0.5, %v4328_v7  ;;  %v1621_v45 = vmul.f32 0.5, %v4365_v44 }
 0x2a5   : > { %v1560_v46 = vpop.f32.mrf.mxu1 }
 0x2a6   : > { %v4322_v11 = vadd.f32 %v1560_v46, %v1448_v31  ;;  %v1451_v31 = vadd.f32 %v1450_v18, %v1306_v2  ;;  %v1625_v2 = vmul.f32 0.5, %v4338_v33  ;;  %v4355_v18 = vpop.permute.xlu2 %1330 }
 0x2a7   : > { %v4326_v53 = vpop.f32.mrf.mxu0 }
 0x2a8   : > { %1607 = vmatmul.f32.gmra.mxu1 %v1193_v32  ;;  %v1628_v36 = vmul.f32 0.5, %v4322_v11  ;;  %v1311_v57 = vpop.permute.xlu0 %1310 }
 0x2a9   : > { %v1454_v13 = vadd.f32 %v1453_v5, %v1311_v57  ;;  %v4379_v5 = vadd.f32 %v4223_v63, %v1421_v3 }
 0x2aa   : > { %2892 = vtanh.f32 %v1628_v36 }
 0x2ab   : > { %2894 = vtanh.f32 %v1627_v10  ;;  %v1622_v10 = vmul.f32 0.5, %v4270_v49 }
 0x2ac   : > { %2896 = vtanh.f32 %v1626_v40 }
 0x2ad   : > { %v1563_v59 = vpop.f32.mrf.mxu1 }
 0x2ae   : > { %v1564_v46 = vadd.f32 %v1563_v59, %v1451_v31  ;;  %v1418_v59 = vadd.f32 %v4174_v35, %v4221_v28  ;;  %v1316_v35 = vpop.permute.xlu2 %1315  ;;  %v1412_v28 = vadd.f32 %v4147_v30, %v4228_v48 }
 0x2af   : > { %v4357_v32 = vpop.f32.mrf.mxu0 }
 0x2b0   : > { %v1629_v8 = vmul.f32 0.5, %v1564_v46  ;;  %1610 = vmatmul.f32.gmra.mxu1 %v1195_v51  ;;  %v2893_v36 = vpop.eup %2892 }
 0x2b1   : > { %v2895_v0 = vpop.eup %2894  ;;  %v1692_v42 = vmul.f32 0.5, %v2893_v36 }
 0x2b2   : > { %2898 = vtanh.f32 %v1629_v8  ;;  %v2897_v24 = vpop.eup %2896  ;;  %v1691_v51 = vmul.f32 0.5, %v2895_v0  ;;  %v4387_v8 = vadd.f32 %v4211_v58, %v1418_v59  ;;  %v1457_v58 = vadd.f32 %v4315_v14, %v1316_v35 }
 0x2b3   : > { %2900 = vtanh.f32 %v1625_v2  ;;  %v1415_v2 = vadd.f32 %v4161_v47, %v4235_v9  ;;  %v1724_v57 = vadd.f32 0.5, %v1692_v42  ;;  %v1690_v25 = vmul.f32 0.5, %v2897_v24 }
 0x2b4   : > { %2902 = vtanh.f32 %v1624_v16  ;;  %v1619_v47 = vmul.f32 0.5, %v4379_v5  ;;  %v1409_v9 = vadd.f32 %v4133_v38, %v4204_v41  ;;  %v1723_v30 = vadd.f32 0.5, %v1691_v51 }
 0x2b5   : > { %v1566_v31 = vpop.f32.mrf.mxu1  ;;  %2904 = vtanh.f32 %v1623_v54  ;;  %v4395_v54 = vadd.f32 %v4199_v39, %v1415_v2  ;;  %v4402_v0 = vadd.f32 %v4189_v15, %v1412_v28  ;;  %v1756_v24 = vmul.f32 %v1724_v57, %v4322_v11 }
 0x2b6   : > { %v4374_v26 = vadd.f32 %v1566_v31, %v1454_v13  ;;  %2906 = vtanh.f32 %v1622_v10  ;;  %v1618_v10 = vmul.f32 0.5, %v4387_v8  ;;  %v1722_v14 = vadd.f32 0.5, %v1690_v25 }
 0x2b7   : > { %v4392_v63 = vpop.f32.mrf.mxu0  ;;  %2908 = vtanh.f32 %v1621_v45  ;;  %v1406_v38 = vadd.f32 %v4119_v60, %v4216_v55  ;;  %v4411_v41 = vadd.f32 %v4179_v43, %v1409_v9  ;;  %v1617_v15 = vmul.f32 0.5, %v4395_v54 }
 0x2b8   : > { %v2899_v40 = vpop.eup %2898  ;;  %2910 = vtanh.f32 %v1620_v50  ;;  %v1616_v51 = vmul.f32 0.5, %v4402_v0  ;;  %v1754_v60 = vmul.f32 %v1722_v14, %v4332_v62 }
 0x2b9   : > { %v1693_v27 = vmul.f32 0.5, %v2899_v40  ;;  %v2901_v61 = vpop.eup %2900  ;;  %2912 = vtanh.f32 %v1619_v47  ;;  %v4416_v11 = vadd.f32 %v4169_v1, %v1406_v38  ;;  %v1615_v50 = vmul.f32 0.5, %v4411_v41 }
 0x2ba   : > { %v2903_v36 = vpop.eup %2902  ;;  %v1689_v48 = vmul.f32 0.5, %v2901_v61  ;;  %2914 = vtanh.f32 %v1618_v10  ;;  %v1321_v61 = vpop.permute.xlu1 %1320 }
 0x2bb   : > { %v1725_v16 = vadd.f32 0.5, %v1693_v27  ;;  %v2905_v31 = vpop.eup %2904  ;;  %v1688_v42 = vmul.f32 0.5, %v2903_v36  ;;  %2916 = vtanh.f32 %v1617_v15  ;;  %v1614_v36 = vmul.f32 0.5, %v4416_v11 }
 0x2bc   : > { %v2907_v40 = vpop.eup %2906  ;;  %v1721_v59 = vadd.f32 0.5, %v1689_v48  ;;  %v1687_v45 = vmul.f32 0.5, %v2905_v31  ;;  %2918 = vtanh.f32 %v1616_v51 }
 0x2bd   : > { %v1569_v13 = vpop.f32.mrf.mxu1  ;;  %v1757_v3 = vmul.f32 %v1725_v16, %v1564_v46  ;;  %v1755_v46 = vmul.f32 %v1723_v30, %v4328_v7  ;;  %v2909_v27 = vpop.eup %2908  ;;  %v1720_v43 = vadd.f32 0.5, %v1688_v42  ;;  %v1686_v55 = vmul.f32 0.5, %v2907_v40 }
 0x2be   : > { %v4405_v39 = vadd.f32 %v1569_v13, %v1457_v58  ;;  %v2911_v2 = vpop.eup %2910  ;;  %v1460_v7 = vadd.f32 %v4326_v53, %v1321_v61  ;;  %v1753_v1 = vmul.f32 %v1721_v59, %v4338_v33  ;;  %v1719_v16 = vadd.f32 0.5, %v1687_v45 }
 0x2bf   : > { %2030 = vmatpush.msra.mxu2 %v1757_v3  ;;  %v4422_v35 = vpop.f32.mrf.mxu0  ;;  %v1685_v57 = vmul.f32 0.5, %v2909_v27  ;;  %v2913_v25 = vpop.eup %2912  ;;  %v1752_v47 = vmul.f32 %v1720_v43, %v4347_v21  ;;  %v1718_v58 = vadd.f32 0.5, %v1686_v55  ;;  %v1684_v9 = vmul.f32 0.5, %v2911_v2 }
 0x2c0   : > { %v2915_v53 = vpop.eup %2914  ;;  %2920 = vtanh.f32 %v1615_v50  ;;  %v1751_v13 = vmul.f32 %v1719_v16, %v4352_v52  ;;  %v1683_v33 = vmul.f32 0.5, %v2913_v25  ;;  %v1463_v21 = vadd.f32 %v4357_v32, %v4330_v12 }
 0x2c1   : > { %2031 = vmatpush.msra.mxu2 %v1756_v24  ;;  %v1717_v3 = vadd.f32 0.5, %v1685_v57  ;;  %v2917_v30 = vpop.eup %2916  ;;  %2922 = vtanh.f32 %v1614_v36  ;;  %v1750_v48 = vmul.f32 %v1718_v58, %v4270_v49  ;;  %v1716_v31 = vadd.f32 0.5, %v1684_v9  ;;  %v1780_v9 = vld [vmem:[%s4878_s5 + $0x30] sm:$0xff] }
 0x2c2   : > { %v1682_v10 = vmul.f32 0.5, %v2915_v53  ;;  %v2919_v24 = vpop.eup %2918  ;;  %v1715_v40 = vadd.f32 0.5, %v1683_v33  ;;  %v1681_v38 = vmul.f32 0.5, %v2917_v30  ;;  %v1466_v43 = vadd.f32 %v4392_v63, %v4355_v18  ;;  %v1774_v18 = vld [vmem:[%s4878_s5] sm:$0xff] }
 0x2c3   : > { %2032 = vmatpush.msra.mxu2 %v1755_v46  ;;  %v1749_v42 = vmul.f32 %v1717_v3, %v4365_v44  ;;  %v1748_v59 = vmul.f32 %v1716_v31, %v4371_v6  ;;  %v1680_v45 = vmul.f32 0.5, %v2919_v24  ;;  %v1469_v63 = vadd.f32 %v4422_v35, %v4382_v4  ;;  %v1778_v4 = vld [vmem:[%s4878_s5 + $0x20] sm:$0xff] }
 0x2c4   : > { %v1714_v49 = vadd.f32 0.5, %v1682_v10  ;;  %v1747_v51 = vmul.f32 %v1715_v40, %v4379_v5  ;;  %v1713_v12 = vadd.f32 0.5, %v1681_v38  ;;  %v1790_v40 = vld [vmem:[%s4878_s5 + $0x80] sm:$0xff] }
 0x2c5   : > { %v1572_v28 = vpop.f32.mrf.mxu1  ;;  %2033 = vmatpush.msra.mxu2 %v1754_v60  ;;  %v1712_v61 = vadd.f32 0.5, %v1680_v45 }
 0x2c6   : > { %v4426_v62 = vadd.f32 %v1572_v28, %v1460_v7  ;;  %v2921_v52 = vpop.eup %2920  ;;  %v1746_v44 = vmul.f32 %v1714_v49, %v4387_v8  ;;  %v1745_v6 = vmul.f32 %v1713_v12, %v4395_v54 }
 0x2c7   : > { %2034 = vmatpush.msra.mxu2 %v1753_v1  ;;  %v1471_v46 = vpop.f32.mrf.mxu0  ;;  %v2923_v27 = vpop.eup %2922  ;;  %v1679_v32 = vmul.f32 0.5, %v2921_v52  ;;  %v1744_v5 = vmul.f32 %v1712_v61, %v4402_v0 }
 0x2c8   : > { %v1678_v60 = vmul.f32 0.5, %v2923_v27  ;;  %v1472_v57 = vadd.f32 %v1471_v46, %v4313_v17  ;;  %v1792_v46 = vld [vmem:[%s4878_s5 + $0x90] sm:$0xff] }
 0x2c9   : > { %2035 = vmatpush.msra.mxu2 %v1752_v47  ;;  %v1711_v2 = vadd.f32 0.5, %v1679_v32 }
 0x2ca   : > { %v1710_v7 = vadd.f32 0.5, %v1678_v60 }
 0x2cb   : > { %2036 = vmatpush.msra.mxu2 %v1751_v13  ;;  %v1743_v8 = vmul.f32 %v1711_v2, %v4411_v41  ;;  %v1776_v41 = vld [vmem:[%s4878_s5 + $0x10] sm:$0xff] }
 0x2cc   : > { %v1742_v1 = vmul.f32 %v1710_v7, %v4416_v11 }
 0x2cd   : > { %v1575_v14 = vpop.f32.mrf.mxu1  ;;  %2037 = vmatpush.msra.mxu2 %v1750_v48  ;;  %v1784_v48 = vld [vmem:[%s4878_s5 + $0x50] sm:$0xff] }
 0x2ce   : > { %v4434_v15 = vadd.f32 %v1575_v14, %v1463_v21  ;;  %v1788_v21 = vld [vmem:[%s4878_s5 + $0x70] sm:$0xff] }
 0x2cf   : > { %2038 = vmatpush.msra.mxu2 %v1749_v42  ;;  %v1474_v28 = vpop.f32.mrf.mxu0 }
 0x2d0   : > { %v1475_v35 = vadd.f32 %v1474_v28, %v4324_v19  ;;  %v1782_v19 = vld [vmem:[%s4878_s5 + $0x40] sm:$0xff] }
 0x2d1   : > { %2039 = vmatpush.msra.mxu2 %v1748_v59 }
 0x2d3   : > { %2040 = vmatpush.msra.mxu2 %v1747_v51 }
 0x2d5   : > { %v1578_v55 = vpop.f32.mrf.mxu1  ;;  %2041 = vmatpush.msra.mxu2 %v1746_v44 }
 0x2d6   : > { %v4442_v50 = vadd.f32 %v1578_v55, %v1466_v43  ;;  %v1794_v43 = vld [vmem:[%s4878_s5 + $0xa0] sm:$0xff] }
 0x2d7   : > { %2042 = vmatpush.msra.mxu2 %v1745_v6  ;;  %v1477_v0 = vpop.f32.mrf.mxu0 }
 0x2d8   : > { %v1478_v17 = vadd.f32 %v1477_v0, %v4349_v37  ;;  %v1786_v37 = vld [vmem:[%s4878_s5 + $0x60] sm:$0xff] }
 0x2d9   : > { %2043 = vmatpush.msra.mxu2 %v1744_v5  ;;  %v4897_v5 = vld [vmem:[#allocation7_spill] sm:$0xff] }
 0x2db   : > { %2044 = vmatpush.msra.mxu2 %v1743_v8 }
 0x2dd   : > { %v1581_v54 = vpop.f32.mrf.mxu1  ;;  %2045 = vmatpush.msra.mxu2 %v1742_v1 }
 0x2de   : > { %v4452_v16 = vadd.f32 %v1581_v54, %v1469_v63  ;;  %2046 = vmatmul.f32.vlgmr.msra.gmra.mxu2 %v1774_v18  ;;  %v1796_v18 = vld [vmem:[%s4878_s5 + $0xb0] sm:$0xff] }
 0x2df   : > { %v1480_v36 = vpop.f32.mrf.mxu0 }
 0x2e0   : > { %v1481_v7 = vadd.f32 %v1480_v36, %v4897_v5 }
 0x2e5   : > { %v1584_v11 = vpop.f32.mrf.mxu1 }
 0x2e6   : > { %v4458_v25 = vadd.f32 %v1584_v11, %v1472_v57  ;;  %2049 = vmatmul.f32.gmra.mxu2 %v1776_v41 }
 0x2e7   : > { %v1483_v3 = vpop.f32.mrf.mxu0 }
 0x2ed   : > { %v1587_v47 = vpop.f32.mrf.mxu1 }
 0x2ee   : > { %v4464_v58 = vadd.f32 %v1587_v47, %v1475_v35  ;;  %2052 = vmatmul.f32.gmra.mxu2 %v1778_v4 }
 0x2ef   : > { %v1486_v30 = vpop.f32.mrf.mxu0 }
 0x2f0   : > { %v1487_v61 = vadd.f32 %v1486_v30, %v4317_v34  ;;  %v1637_v35 = vmul.f32 0.5, %v4464_v58 }
 0x2f5   : > { %v1590_v53 = vpop.f32.mrf.mxu1 }
 0x2f6   : > { %v4470_v13 = vadd.f32 %v1590_v53, %v1478_v17  ;;  %2055 = vmatmul.f32.gmra.mxu2 %v1780_v9  ;;  %v1636_v17 = vmul.f32 0.5, %v4458_v25  ;;  %v1798_v53 = vld [vmem:[%s4878_s5 + $0xc0] sm:$0xff] }
 0x2f7   : > { %v1489_v10 = vpop.f32.mrf.mxu0 }
 0x2f8   : > { %v1490_v51 = vadd.f32 %v1489_v10, %v4291_v29  ;;  %v1638_v41 = vmul.f32 0.5, %v4470_v13 }
 0x2fd   : > { %v1593_v33 = vpop.f32.mrf.mxu1 }
 0x2fe   : > { %2058 = vmatmul.f32.gmra.mxu2 %v1782_v19  ;;  %v4510_v8 = vadd.f32 %v1593_v33, %v1481_v7 }
 0x2ff   : > { %v1492_v14 = vpop.f32.mrf.mxu0 }
 0x300   : > { %v1493_v45 = vadd.f32 %v1492_v14, %v4299_v20  ;;  %v1639_v54 = vmul.f32 0.5, %v4510_v8 }
 0x305   : > { %v1596_v31 = vpop.f32.mrf.mxu1 }
 0x306   : > { %2061 = vmatmul.f32.gmra.mxu2 %v1784_v48  ;;  %v1635_v48 = vmul.f32 0.5, %v4452_v16 }
 0x307   : > { %v1495_v52 = vpop.f32.mrf.mxu0 }
 0x308   : > { %v1496_v59 = vadd.f32 %v1495_v52, %v4306_v23  ;;  %v1484_v23 = vadd.f32 %v1483_v3, %v4308_v22  ;;  %v1633_v52 = vmul.f32 0.5, %v4434_v15 }
 0x30a   : > { %v4508_v28 = vadd.f32 %v1596_v31, %v1484_v23  ;;  %v1631_v23 = vmul.f32 0.5, %v4405_v39 }
 0x30d   : > { %v1599_v24 = vpop.f32.mrf.mxu1 }
 0x30e   : > { %2064 = vmatmul.f32.gmra.mxu2 %v1786_v37  ;;  %v4502_v55 = vadd.f32 %v1599_v24, %v1487_v61 }
 0x30f   : > { %v1498_v32 = vpop.f32.mrf.mxu0 }
 0x310   : > { %v1499_v20 = vadd.f32 %v1498_v32, %v4289_v56  ;;  %v1641_v22 = vmul.f32 0.5, %v4502_v55  ;;  %v1640_v56 = vmul.f32 0.5, %v4508_v28 }
 0x315   : > { %v1602_v42 = vpop.f32.mrf.mxu1 }
 0x316   : > { %2067 = vmatmul.f32.gmra.mxu2 %v1788_v21  ;;  %v4495_v44 = vadd.f32 %v1602_v42, %v1490_v51  ;;  %v1634_v21 = vmul.f32 0.5, %v4442_v50  ;;  %v1632_v51 = vmul.f32 0.5, %v4426_v62 }
 0x318   : > { %v1642_v6 = vmul.f32 0.5, %v4495_v44 }
 0x31d   : > { %v1605_v38 = vpop.f32.mrf.mxu1 }
 0x31e   : > { %2070 = vmatmul.f32.gmra.mxu2 %v1790_v40  ;;  %v4493_v12 = vadd.f32 %v1605_v38, %v1493_v45 }
 0x320   : > { %v1643_v29 = vmul.f32 0.5, %v4493_v12 }
 0x325   : > { %v1608_v49 = vpop.f32.mrf.mxu1 }
 0x326   : > { %v1609_v27 = vadd.f32 %v1608_v49, %v1496_v59  ;;  %2073 = vmatmul.f32.gmra.mxu2 %v1792_v46 }
 0x328   : > { %v1644_v60 = vmul.f32 0.5, %v1609_v27 }
 0x32a   : > { %2924 = vtanh.f32 %v1644_v60 }
 0x32b   : > { %2926 = vtanh.f32 %v1643_v29 }
 0x32c   : > { %2928 = vtanh.f32 %v1642_v6 }
 0x32d   : > { %v1611_v2 = vpop.f32.mrf.mxu1 }
 0x32e   : > { %v1612_v34 = vadd.f32 %v1611_v2, %v1499_v20  ;;  %2076 = vmatmul.f32.gmra.mxu2 %v1794_v43  ;;  %v1630_v2 = vmul.f32 0.5, %v4374_v26 }
 0x330   : > { %v1645_v1 = vmul.f32 0.5, %v1612_v34  ;;  %v2925_v63 = vpop.eup %2924 }
 0x331   : > { %v2927_v0 = vpop.eup %2926  ;;  %v1708_v11 = vmul.f32 0.5, %v2925_v63  ;;  %v1802_v63 = vld [vmem:[%s4878_s5 + $0xe0] sm:$0xff] }
 0x332   : > { %2930 = vtanh.f32 %v1645_v1  ;;  %v2929_v57 = vpop.eup %2928  ;;  %v1707_v47 = vmul.f32 0.5, %v2927_v0 }
 0x333   : > { %2932 = vtanh.f32 %v1641_v22  ;;  %v1740_v19 = vadd.f32 0.5, %v1708_v11  ;;  %v1706_v33 = vmul.f32 0.5, %v2929_v57 }
 0x334   : > { %2934 = vtanh.f32 %v1640_v56  ;;  %v1739_v10 = vadd.f32 0.5, %v1707_v47 }
 0x335   : > { %2936 = vtanh.f32 %v1639_v54  ;;  %v1772_v14 = vmul.f32 %v1740_v19, %v1609_v27  ;;  %v1738_v42 = vadd.f32 0.5, %v1706_v33  ;;  %v1800_v27 = vld [vmem:[%s4878_s5 + $0xd0] sm:$0xff] }
 0x336   : > { %2079 = vmatmul.f32.gmra.mxu2 %v1796_v18  ;;  %2938 = vtanh.f32 %v1638_v41  ;;  %v1771_v46 = vmul.f32 %v1739_v10, %v4493_v12  ;;  %v1779_v10 = vld [vmem:[%s4878_s5 + $0x28] sm:$0xff] }
 0x337   : > { %2940 = vtanh.f32 %v1637_v35  ;;  %v1770_v32 = vmul.f32 %v1738_v42, %v4495_v44  ;;  %v1816_v42 = vld [vmem:[%s4878_s5 + $0x150] sm:$0xff] }
 0x338   : > { %v2931_v4 = vpop.eup %2930  ;;  %2942 = vtanh.f32 %v1636_v17 }
 0x339   : > { %v1709_v36 = vmul.f32 0.5, %v2931_v4  ;;  %v2933_v9 = vpop.eup %2932  ;;  %2944 = vtanh.f32 %v1635_v48 }
 0x33a   : > { %v2935_v30 = vpop.eup %2934  ;;  %v1705_v37 = vmul.f32 0.5, %v2933_v9  ;;  %2946 = vtanh.f32 %v1634_v21  ;;  %v1814_v21 = vld [vmem:[%s4878_s5 + $0x140] sm:$0xff] }
 0x33b   : > { %v1741_v3 = vadd.f32 0.5, %v1709_v36  ;;  %v2937_v24 = vpop.eup %2936  ;;  %v1704_v40 = vmul.f32 0.5, %v2935_v30  ;;  %2948 = vtanh.f32 %v1633_v52  ;;  %v1787_v52 = vld [vmem:[%s4878_s5 + $0x68] sm:$0xff] }
 0x33c   : > { %v2939_v38 = vpop.eup %2938  ;;  %v1737_v59 = vadd.f32 0.5, %v1705_v37  ;;  %v1703_v49 = vmul.f32 0.5, %v2937_v24  ;;  %2950 = vtanh.f32 %v1632_v51  ;;  %v1812_v37 = vld [vmem:[%s4878_s5 + $0x130] sm:$0xff]  ;;  %v1781_v24 = vld [vmem:[%s4878_s5 + $0x38] sm:$0xff]  ;;  %v4605_v51 = vpop.permute.xlu2 %1877 }
 0x33d   : > { %v1773_v31 = vmul.f32 %v1741_v3, %v1612_v34  ;;  %v2941_v45 = vpop.eup %2940  ;;  %v1736_v61 = vadd.f32 0.5, %v1704_v40  ;;  %v1702_v60 = vmul.f32 0.5, %v2939_v38  ;;  %2952 = vtanh.f32 %v1631_v23  ;;  %v1785_v40 = vld [vmem:[%s4878_s5 + $0x58] sm:$0xff]  ;;  %v1818_v38 = vld [vmem:[%s4878_s5 + $0x160] sm:$0xff] }
 0x33e   : > { %2082 = vmatmul.f32.gmra.mxu2 %v1798_v53  ;;  %v2943_v43 = vpop.eup %2942  ;;  %v1769_v12 = vmul.f32 %v1737_v59, %v4502_v55  ;;  %v1735_v20 = vadd.f32 0.5, %v1703_v49  ;;  %v1701_v29 = vmul.f32 0.5, %v2941_v45  ;;  %2954 = vtanh.f32 %v1630_v2  ;;  %v1820_v49 = vld [vmem:[%s4878_s5 + $0x170] sm:$0xff]  ;;  %v1789_v45 = vld [vmem:[%s4878_s5 + $0x78] sm:$0xff] }
 0x33f   : > { %2143 = vmatpush.msra.mxu3 %v1773_v31  ;;  %v2945_v6 = vpop.eup %2944  ;;  %v1768_v44 = vmul.f32 %v1736_v61, %v4508_v28  ;;  %v1734_v5 = vadd.f32 0.5, %v1702_v60  ;;  %v1700_v7 = vmul.f32 0.5, %v2943_v43  ;;  %v1806_v31 = vld [vmem:[%s4878_s5 + $0x100] sm:$0xff]  ;;  %v1791_v43 = vld [vmem:[%s4878_s5 + $0x88] sm:$0xff] }
 0x340   : > { %v2947_v34 = vpop.eup %2946  ;;  %v1767_v22 = vmul.f32 %v1735_v20, %v4510_v8  ;;  %v1733_v1 = vadd.f32 0.5, %v1701_v29  ;;  %v1699_v56 = vmul.f32 0.5, %v2945_v6  ;;  %v1822_v60 = vld [vmem:[%s4878_s5 + $0x180] sm:$0xff]  ;;  %v1824_v29 = vld [vmem:[%s4878_s5 + $0x190] sm:$0xff]  ;;  %v1793_v6 = vld [vmem:[%s4878_s5 + $0x98] sm:$0xff] }
 0x341   : > { %2144 = vmatpush.msra.mxu3 %v1772_v14  ;;  %v2949_v55 = vpop.eup %2948  ;;  %v1766_v18 = vmul.f32 %v1734_v5, %v4470_v13  ;;  %v1732_v54 = vadd.f32 0.5, %v1700_v7  ;;  %v1698_v28 = vmul.f32 0.5, %v2947_v34  ;;  %v1783_v14 = vld [vmem:[%s4878_s5 + $0x48] sm:$0xff]  ;;  %v1826_v34 = vld [vmem:[%s4878_s5 + $0x1a0] sm:$0xff] }
 0x342   : > { %v2951_v0 = vpop.eup %2950  ;;  %v1765_v41 = vmul.f32 %v1733_v1, %v4464_v58  ;;  %v1731_v57 = vadd.f32 0.5, %v1699_v56  ;;  %v1697_v11 = vmul.f32 0.5, %v2949_v55  ;;  %v1804_v58 = vld [vmem:[%s4878_s5 + $0xf0] sm:$0xff] }
 0x343   : > { %2145 = vmatpush.msra.mxu3 %v1771_v46  ;;  %v2953_v8 = vpop.eup %2952  ;;  %v1764_v4 = vmul.f32 %v1732_v54, %v4458_v25  ;;  %v1730_v35 = vadd.f32 0.5, %v1698_v28  ;;  %v1696_v36 = vmul.f32 0.5, %v2951_v0  ;;  %v4595_v46 = vpop.permute.xlu1 %1872  ;;  %v1828_v55 = vld [vmem:[%s4878_s5 + $0x1b0] sm:$0xff]  ;;  %v1830_v0 = vld [vmem:[%s4878_s5 + $0x1c0] sm:$0xff] }
 0x344   : > { %v2955_v13 = vpop.eup %2954  ;;  %v1763_v47 = vmul.f32 %v1731_v57, %v4452_v16  ;;  %v1729_v9 = vadd.f32 0.5, %v1697_v11  ;;  %v1695_v17 = vmul.f32 0.5, %v2953_v8  ;;  %v4619_v23 = vpop.permute.xlu2 %1892 }
 0x345   : > { %2146 = vmatpush.msra.mxu3 %v1770_v32  ;;  %v1762_v53 = vmul.f32 %v1730_v35, %v4442_v50  ;;  %v1728_v3 = vadd.f32 0.5, %v1696_v36  ;;  %v1694_v19 = vmul.f32 0.5, %v2955_v13  ;;  %v4607_v32 = vpop.permute.xlu0 %1882  ;;  %v1832_v35 = vld [vmem:[%s4878_s5 + $0x1d0] sm:$0xff]  ;;  %v1801_v36 = vld [vmem:[%s4878_s5 + $0xd8] sm:$0xff] }
 0x346   : > { %2085 = vmatmul.f32.gmra.mxu2 %v1800_v27  ;;  %v1761_v25 = vmul.f32 %v1729_v9, %v4434_v15  ;;  %v1727_v33 = vadd.f32 0.5, %v1695_v17  ;;  %v1775_v15 = vld [vmem:[%s4878_s5 + $0x8] sm:$0xff]  ;;  %v1834_v17 = vld [vmem:[%s4878_s5 + $0x1e0] sm:$0xff] }
 0x347   : > { %2147 = vmatpush.msra.mxu3 %v1769_v12  ;;  %v1760_v30 = vmul.f32 %v1728_v3, %v4426_v62  ;;  %v1726_v16 = vadd.f32 0.5, %v1694_v19  ;;  %v1808_v62 = vld [vmem:[%s4878_s5 + $0x110] sm:$0xff] }
 0x348   : > { %v1759_v48 = vmul.f32 %v1727_v33, %v4405_v39  ;;  %v1777_v39 = vld [vmem:[%s4878_s5 + $0x18] sm:$0xff]  ;;  %v1836_v33 = vld [vmem:[%s4878_s5 + $0x1f0] sm:$0xff] }
 0x349   : > { %2148 = vmatpush.msra.mxu3 %v1768_v44  ;;  %v1758_v50 = vmul.f32 %v1726_v16, %v4374_v26  ;;  %v1810_v26 = vld [vmem:[%s4878_s5 + $0x120] sm:$0xff] }
 0x34b   : > { %2149 = vmatpush.msra.mxu3 %v1767_v22  ;;  %v4609_v27 = vpop.permute.xlu1 %1887  ;;  %v1795_v22 = vld [vmem:[%s4878_s5 + $0xa8] sm:$0xff] }
 0x34c   : > { %v4633_v44 = vpop.permute.xlu2 %1907 }
 0x34d   : > { %2150 = vmatpush.msra.mxu3 %v1766_v18  ;;  %v4621_v12 = vpop.permute.xlu0 %1897  ;;  %v1797_v18 = vld [vmem:[%s4878_s5 + $0xb8] sm:$0xff] }
 0x34e   : > { %2088 = vmatmul.f32.gmra.mxu2 %v1802_v63 }
 0x34f   : > { %2151 = vmatpush.msra.mxu3 %v1765_v41  ;;  %v1799_v41 = vld [vmem:[%s4878_s5 + $0xc8] sm:$0xff] }
 0x351   : > { %2152 = vmatpush.msra.mxu3 %v1764_v4 }
 0x353   : > { %2153 = vmatpush.msra.mxu3 %v1763_v47  ;;  %v4623_v20 = vpop.permute.xlu1 %1902 }
 0x354   : > { %v4647_v56 = vpop.permute.xlu2 %1922 }
 0x355   : > { %2154 = vmatpush.msra.mxu3 %v1762_v53  ;;  %v4635_v5 = vpop.permute.xlu0 %1912  ;;  %v1803_v53 = vld [vmem:[%s4878_s5 + $0xe8] sm:$0xff] }
 0x356   : > { %2091 = vmatmul.f32.gmra.mxu2 %v1804_v58 }
 0x357   : > { %2155 = vmatpush.msra.mxu3 %v1761_v25 }
 0x359   : > { %2156 = vmatpush.msra.mxu3 %v1760_v30  ;;  %v1805_v30 = vld [vmem:[%s4878_s5 + $0xf8] sm:$0xff] }
 0x35b   : > { %2157 = vmatpush.msra.mxu3 %v1759_v48  ;;  %v4637_v7 = vpop.permute.xlu1 %1917 }
 0x35c   : > { %v4667_v57 = vpop.permute.xlu2 %1937 }
 0x35d   : > { %2158 = vmatpush.msra.mxu3 %v1758_v50  ;;  %v4655_v63 = vpop.permute.xlu0 %1927  ;;  %v1807_v50 = vld [vmem:[%s4878_s5 + $0x108] sm:$0xff] }
 0x35e   : > { %2094 = vmatmul.f32.gmra.mxu2 %v1806_v31  ;;  %2159 = vmatmul.f32.vlgmr.msra.gmra.mxu3 %v1775_v15 }
 0x361   : > { %v4597_v59 = vpop.f32.mrf.mxu2 }
 0x363   : > { %v4657_v54 = vpop.permute.xlu1 %1932 }
 0x364   : > { %v4681_v13 = vpop.permute.xlu2 %1952 }
 0x365   : > { %v4669_v11 = vpop.permute.xlu0 %1942 }
 0x366   : > { %2097 = vmatmul.f32.gmra.mxu2 %v1808_v62  ;;  %2162 = vmatmul.f32.gmra.mxu3 %v1777_v39  ;;  %v2048_v62 = vadd.f32 %v4597_v59, %v4595_v46 }
 0x369   : > { %v4611_v61 = vpop.f32.mrf.mxu2 }
 0x36b   : > { %v4671_v8 = vpop.permute.xlu1 %1947 }
 0x36c   : > { %v4695_v3 = vpop.permute.xlu2 %1967 }
 0x36d   : > { %v4683_v47 = vpop.permute.xlu0 %1957 }
 0x36e   : > { %2100 = vmatmul.f32.gmra.mxu2 %v1810_v26  ;;  %2165 = vmatmul.f32.gmra.mxu3 %v1779_v10  ;;  %v1809_v10 = vld [vmem:[%s4878_s5 + $0x118] sm:$0xff] }
 0x371   : > { %v4631_v2 = vpop.f32.mrf.mxu2 }
 0x373   : > { %v4685_v9 = vpop.permute.xlu1 %1962 }
 0x374   : > { %v4709_v48 = vpop.permute.xlu2 %1982 }
 0x375   : > { %v4697_v19 = vpop.permute.xlu0 %1972 }
 0x376   : > { %2103 = vmatmul.f32.gmra.mxu2 %v1812_v37  ;;  %2168 = vmatmul.f32.gmra.mxu3 %v1781_v24 }
 0x379   : > { %v4645_v1 = vpop.f32.mrf.mxu2 }
 0x37b   : > { %v4699_v25 = vpop.permute.xlu1 %1977 }
 0x37c   : > { %v4723_v37 = vpop.permute.xlu2 %1997 }
 0x37d   : > { %v4714_v31 = vpop.permute.xlu0 %1987 }
 0x37e   : > { %2106 = vmatmul.f32.gmra.mxu2 %v1814_v21  ;;  %2171 = vmatmul.f32.gmra.mxu3 %v1783_v14 }
 0x381   : > { %v4659_v28 = vpop.f32.mrf.mxu2 }
 0x383   : > { %v4716_v15 = vpop.permute.xlu1 %1992 }
 0x385   : > { %v4725_v21 = vpop.permute.xlu0 %2002 }
 0x386   : > { %2109 = vmatmul.f32.gmra.mxu2 %v1816_v42  ;;  %2174 = vmatmul.f32.gmra.mxu3 %v1785_v40  ;;  %v2051_v42 = vadd.f32 %v4611_v61, %v4605_v51  ;;  %v2054_v51 = vadd.f32 %v4631_v2, %v4607_v32 }
 0x389   : > { %v4673_v4 = vpop.f32.mrf.mxu2 }
 0x38b   : > { %v4727_v14 = vpop.permute.xlu1 %2007 }
 0x38e   : > { %2112 = vmatmul.f32.gmra.mxu2 %v1818_v38  ;;  %2177 = vmatmul.f32.gmra.mxu3 %v1787_v52  ;;  %v1811_v52 = vld [vmem:[%s4878_s5 + $0x128] sm:$0xff] }
 0x391   : > { %v4693_v58 = vpop.f32.mrf.mxu2 }
 0x396   : > { %2115 = vmatmul.f32.gmra.mxu2 %v1820_v49  ;;  %2180 = vmatmul.f32.gmra.mxu3 %v1789_v45  ;;  %v4734_v49 = vpop.permute.xlu2 %2012 }
 0x399   : > { %v4707_v16 = vpop.f32.mrf.mxu2 }
 0x39e   : > { %2118 = vmatmul.f32.gmra.mxu2 %v1822_v60  ;;  %2183 = vmatmul.f32.gmra.mxu3 %v1791_v43  ;;  %v4738_v43 = vpop.permute.xlu0 %2017 }
 0x3a1   : > { %v4736_v45 = vpop.f32.mrf.mxu2 }
 0x3a6   : > { %2121 = vmatmul.f32.gmra.mxu2 %v1824_v29  ;;  %2186 = vmatmul.f32.gmra.mxu3 %v1793_v6  ;;  %v4740_v29 = vpop.permute.xlu1 %2022 }
 0x3a9   : > { %v4751_v32 = vpop.f32.mrf.mxu2 }
 0x3ae   : > { %2124 = vmatmul.f32.gmra.mxu2 %v1826_v34  ;;  %2189 = vmatmul.f32.gmra.mxu3 %v1795_v22  ;;  %v1813_v22 = vld [vmem:[%s4878_s5 + $0x138] sm:$0xff] }
 0x3b6   : > { %2127 = vmatmul.f32.gmra.mxu2 %v1828_v55  ;;  %2192 = vmatmul.f32.gmra.mxu3 %v1797_v18 }
 0x3be   : > { %2130 = vmatmul.f32.gmra.mxu2 %v1830_v0  ;;  %2195 = vmatmul.f32.gmra.mxu3 %v1799_v41 }
 0x3c6   : > { %2133 = vmatmul.f32.gmra.mxu2 %v1832_v35  ;;  %2198 = vmatmul.f32.gmra.mxu3 %v1801_v36  ;;  %v4747_v36 = vpop.permute.xlu2 %2027 }
 0x3ce   : > { %2136 = vmatmul.f32.gmra.mxu2 %v1834_v17  ;;  %2201 = vmatmul.f32.gmra.mxu3 %v1803_v53  ;;  %v2057_v17 = vadd.f32 %v4645_v1, %v4609_v27  ;;  %v2060_v1 = vadd.f32 %v4659_v28, %v4619_v23  ;;  %v2063_v23 = vadd.f32 %v4673_v4, %v4621_v12 }
 0x3cf   : > { %v2066_v12 = vadd.f32 %v4693_v58, %v4623_v20  ;;  %v2069_v20 = vadd.f32 %v4707_v16, %v4633_v44 }
 0x3d6   : > { %2139 = vmatmul.f32.gmra.mxu2 %v1836_v33  ;;  %2204 = vmatmul.f32.gmra.mxu3 %v1805_v30  ;;  %v2451_v33 = vpop.permute.xlu0 %2450  ;;  %v2456_v30 = vpop.permute.xlu1 %2455 }
 0x3de   : > { %2207 = vmatmul.f32.gmra.mxu3 %v1807_v50 }
 0x3e1   : > { %v2160_v39 = vpop.f32.mrf.mxu3 }
 0x3e2   : > { %v2161_v26 = vadd.f32 %v2160_v39, %v2048_v62 }
 0x3e4   : > { %v2256_v24 = vmul.f32 0.5, %v2161_v26 }
 0x3e6   : > { %2956 = vtanh.f32 %v2256_v24  ;;  %2210 = vmatmul.f32.gmra.mxu3 %v1809_v10  ;;  %v1815_v10 = vld [vmem:[%s4878_s5 + $0x148] sm:$0xff] }
 0x3e9   : > { %v2163_v40 = vpop.f32.mrf.mxu3 }
 0x3ea   : > { %v2164_v38 = vadd.f32 %v2163_v40, %v2051_v42 }
 0x3ec   : > { %v2957_v46 = vpop.eup %2956  ;;  %v2257_v59 = vmul.f32 0.5, %v2164_v38 }
 0x3ed   : > { %v2320_v60 = vmul.f32 0.5, %v2957_v46  ;;  %v2461_v46 = vpop.permute.xlu2 %2460 }
 0x3ee   : > { %2958 = vtanh.f32 %v2257_v59  ;;  %2213 = vmatmul.f32.gmra.mxu3 %v1811_v52 }
 0x3ef   : > { %v2352_v34 = vadd.f32 0.5, %v2320_v60  ;;  %v4758_v60 = vpop.f32.mrf.mxu2 }
 0x3f1   : > { %v2166_v61 = vpop.f32.mrf.mxu3  ;;  %v2384_v41 = vmul.f32 %v2352_v34, %v2161_v26 }
 0x3f2   : > { %v2167_v6 = vadd.f32 %v2166_v61, %v2054_v51  ;;  %v1817_v61 = vld [vmem:[%s4878_s5 + $0x158] sm:$0xff] }
 0x3f3   : > { %v2608_v62 = vmul.f32 %v2451_v33, %v2384_v41  ;;  %v2466_v41 = vpop.permute.xlu0 %2465 }
 0x3f4   : > { %v2959_v55 = vpop.eup %2958  ;;  %v2258_v18 = vmul.f32 0.5, %v2167_v6 }
 0x3f5   : > { %v2321_v0 = vmul.f32 0.5, %v2959_v55 }
 0x3f6   : > { %2960 = vtanh.f32 %v2258_v18  ;;  %2216 = vmatmul.f32.gmra.mxu3 %v1813_v22 }
 0x3f7   : > { %v2353_v35 = vadd.f32 0.5, %v2321_v0 }
 0x3f9   : > { %v2385_v2 = vmul.f32 %v2353_v35, %v2164_v38  ;;  %v2169_v53 = vpop.f32.mrf.mxu3 }
 0x3fa   : > { %v2170_v50 = vadd.f32 %v2169_v53, %v2057_v17 }
 0x3fb   : > { %v2609_v39 = vmul.f32 %v2456_v30, %v2385_v2  ;;  %v1819_v2 = vld [vmem:[%s4878_s5 + $0x168] sm:$0xff]  ;;  %v4768_v30 = vpop.f32.mrf.mxu2 }
 0x3fc   : > { %v2961_v26 = vpop.eup %2960  ;;  %v2259_v24 = vmul.f32 0.5, %v2170_v50 }
 0x3fd   : > { %v2640_v42 = vadd.f32 %v2609_v39, %v2608_v62  ;;  %v2322_v40 = vmul.f32 0.5, %v2961_v26  ;;  %v2471_v26 = vpop.permute.xlu1 %2470 }
 0x3fe   : > { %2962 = vtanh.f32 %v2259_v24  ;;  %2219 = vmatmul.f32.gmra.mxu3 %v1815_v10 }
 0x3ff   : > { %v2354_v27 = vadd.f32 0.5, %v2322_v40  ;;  %v1821_v40 = vld [vmem:[%s4878_s5 + $0x178] sm:$0xff] }
 0x401   : > { %v2386_v38 = vmul.f32 %v2354_v27, %v2167_v6  ;;  %v2172_v52 = vpop.f32.mrf.mxu3 }
 0x402   : > { %v2173_v59 = vadd.f32 %v2172_v52, %v2060_v1 }
 0x403   : > { %v2610_v51 = vmul.f32 %v2461_v46, %v2386_v38  ;;  %v4775_v46 = vpop.f32.mrf.mxu2 }
 0x404   : > { %v2963_v34 = vpop.eup %2962  ;;  %v2260_v22 = vmul.f32 0.5, %v2173_v59 }
 0x405   : > { %v2641_v55 = vadd.f32 %v2640_v42, %v2610_v51  ;;  %v2323_v18 = vmul.f32 0.5, %v2963_v34 }
 0x406   : > { %2964 = vtanh.f32 %v2260_v22  ;;  %2222 = vmatmul.f32.gmra.mxu3 %v1817_v61  ;;  %v2476_v61 = vpop.permute.xlu2 %2475 }
 0x407   : > { %v2355_v0 = vadd.f32 0.5, %v2323_v18 }
 0x409   : > { %v2387_v28 = vmul.f32 %v2355_v0, %v2170_v50  ;;  %v2175_v6 = vpop.f32.mrf.mxu3 }
 0x40a   : > { %v2176_v35 = vadd.f32 %v2175_v6, %v2063_v23 }
 0x40b   : > { %v2611_v17 = vmul.f32 %v2466_v41, %v2387_v28  ;;  %v2072_v41 = vadd.f32 %v4736_v45, %v4635_v5  ;;  %v4784_v44 = vpop.f32.mrf.mxu2  ;;  %v2075_v5 = vadd.f32 %v4751_v32, %v4637_v7  ;;  %v2078_v7 = vadd.f32 %v4758_v60, %v4647_v56 }
 0x40c   : > { %v2965_v53 = vpop.eup %2964  ;;  %v2261_v33 = vmul.f32 0.5, %v2176_v35  ;;  %v2081_v56 = vadd.f32 %v4768_v30, %v4655_v63  ;;  %v2084_v63 = vadd.f32 %v4775_v46, %v4657_v54 }
 0x40d   : > { %v2642_v62 = vadd.f32 %v2641_v55, %v2611_v17  ;;  %v2324_v39 = vmul.f32 0.5, %v2965_v53  ;;  %v1823_v55 = vld [vmem:[%s4878_s5 + $0x188] sm:$0xff]  ;;  %v2481_v17 = vpop.permute.xlu0 %2480 }
 0x40e   : > { %2966 = vtanh.f32 %v2261_v33  ;;  %2225 = vmatmul.f32.gmra.mxu3 %v1819_v2  ;;  %v1825_v33 = vld [vmem:[%s4878_s5 + $0x198] sm:$0xff] }
 0x40f   : > { %v2356_v10 = vadd.f32 0.5, %v2324_v39 }
 0x411   : > { %v2388_v4 = vmul.f32 %v2356_v10, %v2173_v59  ;;  %v2178_v50 = vpop.f32.mrf.mxu3 }
 0x412   : > { %v2179_v24 = vadd.f32 %v2178_v50, %v2066_v12 }
 0x413   : > { %v2612_v42 = vmul.f32 %v2471_v26, %v2388_v4  ;;  %v2486_v26 = vpop.permute.xlu1 %2485 }
 0x414   : > { %v2967_v27 = vpop.eup %2966  ;;  %v2262_v1 = vmul.f32 0.5, %v2179_v24 }
 0x415   : > { %v2643_v38 = vadd.f32 %v2642_v62, %v2612_v42  ;;  %v2325_v52 = vmul.f32 0.5, %v2967_v27  ;;  %v4791_v42 = vpop.f32.mrf.mxu2  ;;  %v1827_v27 = vld [vmem:[%s4878_s5 + $0x1a8] sm:$0xff] }
 0x416   : > { %2968 = vtanh.f32 %v2262_v1  ;;  %2228 = vmatmul.f32.gmra.mxu3 %v1821_v40 }
 0x417   : > { %v2357_v51 = vadd.f32 0.5, %v2325_v52 }
 0x419   : > { %v2389_v58 = vmul.f32 %v2357_v51, %v2176_v35  ;;  %v2181_v59 = vpop.f32.mrf.mxu3 }
 0x41a   : > { %v2182_v34 = vadd.f32 %v2181_v59, %v2069_v20  ;;  %v2491_v59 = vpop.permute.xlu2 %2490 }
 0x41b   : > { %v2613_v22 = vmul.f32 %v2476_v61, %v2389_v58 }
 0x41c   : > { %v2969_v18 = vpop.eup %2968  ;;  %v2263_v0 = vmul.f32 0.5, %v2182_v34 }
 0x41d   : > { %v2644_v23 = vadd.f32 %v2643_v38, %v2613_v22  ;;  %v2326_v28 = vmul.f32 0.5, %v2969_v18  ;;  %v1829_v22 = vld [vmem:[%s4878_s5 + $0x1b8] sm:$0xff] }
 0x41e   : > { %2970 = vtanh.f32 %v2263_v0  ;;  %2231 = vmatmul.f32.gmra.mxu3 %v1823_v55  ;;  %v4801_v0 = vpop.f32.mrf.mxu2 }
 0x41f   : > { %v2358_v6 = vadd.f32 0.5, %v2326_v28 }
 0x421   : > { %v2390_v16 = vmul.f32 %v2358_v6, %v2179_v24  ;;  %v2184_v35 = vpop.f32.mrf.mxu3 }
 0x422   : > { %v2185_v2 = vadd.f32 %v2184_v35, %v2072_v41 }
 0x423   : > { %v2614_v53 = vmul.f32 %v2481_v17, %v2390_v16  ;;  %v2496_v16 = vpop.permute.xlu0 %2495 }
 0x424   : > { %v2971_v62 = vpop.eup %2970  ;;  %v2264_v39 = vmul.f32 0.5, %v2185_v2 }
 0x425   : > { %v2645_v10 = vadd.f32 %v2644_v23, %v2614_v53  ;;  %v2327_v12 = vmul.f32 0.5, %v2971_v62 }
 0x426   : > { %2972 = vtanh.f32 %v2264_v39  ;;  %2234 = vmatmul.f32.gmra.mxu3 %v1825_v33 }
 0x427   : > { %v2359_v4 = vadd.f32 0.5, %v2327_v12 }
 0x429   : > { %v2391_v45 = vmul.f32 %v2359_v4, %v2182_v34  ;;  %v2187_v50 = vpop.f32.mrf.mxu3 }
 0x42a   : > { %v2188_v24 = vadd.f32 %v2187_v50, %v2075_v5  ;;  %v2501_v5 = vpop.permute.xlu1 %2500 }
 0x42b   : > { %v2615_v40 = vmul.f32 %v2486_v26, %v2391_v45  ;;  %v1833_v26 = vld [vmem:[%s4878_s5 + $0x1d8] sm:$0xff] }
 0x42c   : > { %v2973_v1 = vpop.eup %2972  ;;  %v2265_v38 = vmul.f32 0.5, %v2188_v24 }
 0x42d   : > { %v2646_v52 = vadd.f32 %v2645_v10, %v2615_v40  ;;  %v2328_v51 = vmul.f32 0.5, %v2973_v1  ;;  %v2095_v10 = vpop.f32.mrf.mxu2 }
 0x42e   : > { %2974 = vtanh.f32 %v2265_v38  ;;  %2237 = vmatmul.f32.gmra.mxu3 %v1827_v27 }
 0x42f   : > { %v2360_v20 = vadd.f32 0.5, %v2328_v51 }
 0x431   : > { %v2392_v32 = vmul.f32 %v2360_v20, %v2185_v2  ;;  %v2190_v58 = vpop.f32.mrf.mxu3  ;;  %v1831_v2 = vld [vmem:[%s4878_s5 + $0x1c8] sm:$0xff]  ;;  %v2506_v20 = vpop.permute.xlu2 %2505 }
 0x432   : > { %v2191_v61 = vadd.f32 %v2190_v58, %v2078_v7  ;;  %v1835_v58 = vld [vmem:[%s4878_s5 + $0x1e8] sm:$0xff] }
 0x433   : > { %v2616_v34 = vmul.f32 %v2491_v59, %v2392_v32 }
 0x434   : > { %v2975_v55 = vpop.eup %2974  ;;  %v2266_v18 = vmul.f32 0.5, %v2191_v61 }
 0x435   : > { %v2647_v23 = vadd.f32 %v2646_v52, %v2616_v34  ;;  %v2329_v28 = vmul.f32 0.5, %v2975_v55  ;;  %v2087_v52 = vadd.f32 %v4784_v44, %v4667_v57  ;;  %v2098_v54 = vpop.f32.mrf.mxu2  ;;  %v2090_v57 = vadd.f32 %v4791_v42, %v4669_v11 }
 0x436   : > { %2976 = vtanh.f32 %v2266_v18  ;;  %2240 = vmatmul.f32.gmra.mxu3 %v1829_v22  ;;  %v2093_v11 = vadd.f32 %v4801_v0, %v4671_v8 }
 0x437   : > { %v2361_v6 = vadd.f32 0.5, %v2329_v28 }
 0x439   : > { %v2393_v60 = vmul.f32 %v2361_v6, %v2188_v24  ;;  %v2193_v41 = vpop.f32.mrf.mxu3 }
 0x43a   : > { %v2194_v35 = vadd.f32 %v2193_v41, %v2081_v56 }
 0x43b   : > { %v2617_v17 = vmul.f32 %v2496_v16, %v2393_v60  ;;  %v1837_v60 = vld [vmem:[%s4878_s5 + $0x1f8] sm:$0xff] }
 0x43c   : > { %v2977_v53 = vpop.eup %2976  ;;  %v2267_v33 = vmul.f32 0.5, %v2194_v35 }
 0x43d   : > { %v2648_v62 = vadd.f32 %v2647_v23, %v2617_v17  ;;  %v2330_v39 = vmul.f32 0.5, %v2977_v53  ;;  %v2511_v23 = vpop.permute.xlu0 %2510  ;;  %v2101_v6 = vpop.f32.mrf.mxu2 }
 0x43e   : > { %2978 = vtanh.f32 %v2267_v33  ;;  %2243 = vmatmul.f32.gmra.mxu3 %v1831_v2  ;;  %v2516_v33 = vpop.permute.xlu1 %2515 }
 0x43f   : > { %v2362_v12 = vadd.f32 0.5, %v2330_v39 }
 0x441   : > { %v2394_v30 = vmul.f32 %v2362_v12, %v2191_v61  ;;  %v2196_v4 = vpop.f32.mrf.mxu3 }
 0x442   : > { %v2197_v45 = vadd.f32 %v2196_v4, %v2084_v63 }
 0x443   : > { %v2618_v50 = vmul.f32 %v2501_v5, %v2394_v30 }
 0x444   : > { %v2979_v24 = vpop.eup %2978  ;;  %v2268_v40 = vmul.f32 0.5, %v2197_v45 }
 0x445   : > { %v2649_v27 = vadd.f32 %v2648_v62, %v2618_v50  ;;  %v2331_v1 = vmul.f32 0.5, %v2979_v24  ;;  %v2104_v30 = vpop.f32.mrf.mxu2  ;;  %v2096_v50 = vadd.f32 %v2095_v10, %v4681_v13 }
 0x446   : > { %2980 = vtanh.f32 %v2268_v40  ;;  %2246 = vmatmul.f32.gmra.mxu3 %v1833_v26  ;;  %v2521_v40 = vpop.permute.xlu2 %2520 }
 0x447   : > { %v2363_v38 = vadd.f32 0.5, %v2331_v1 }
 0x449   : > { %v2395_v46 = vmul.f32 %v2363_v38, %v2194_v35  ;;  %v2199_v51 = vpop.f32.mrf.mxu3 }
 0x44a   : > { %v2200_v7 = vadd.f32 %v2199_v51, %v2087_v52 }
 0x44b   : > { %v2619_v32 = vmul.f32 %v2506_v20, %v2395_v46  ;;  %v2099_v20 = vadd.f32 %v2098_v54, %v4683_v47 }
 0x44c   : > { %v2981_v59 = vpop.eup %2980  ;;  %v2269_v61 = vmul.f32 0.5, %v2200_v7 }
 0x44d   : > { %v2650_v34 = vadd.f32 %v2649_v27, %v2619_v32  ;;  %v2332_v22 = vmul.f32 0.5, %v2981_v59  ;;  %v2107_v46 = vpop.f32.mrf.mxu2 }
 0x44e   : > { %2982 = vtanh.f32 %v2269_v61  ;;  %2249 = vmatmul.f32.gmra.mxu3 %v1835_v58  ;;  %v2526_v58 = vpop.permute.xlu0 %2525 }
 0x44f   : > { %v2364_v55 = vadd.f32 0.5, %v2332_v22 }
 0x451   : > { %v2396_v44 = vmul.f32 %v2364_v55, %v2197_v45  ;;  %v2202_v18 = vpop.f32.mrf.mxu3 }
 0x452   : > { %v2203_v28 = vadd.f32 %v2202_v18, %v2090_v57  ;;  %v2102_v57 = vadd.f32 %v2101_v6, %v4685_v9 }
 0x453   : > { %v2620_v56 = vmul.f32 %v2511_v23, %v2396_v44 }
 0x454   : > { %v2983_v41 = vpop.eup %2982  ;;  %v2270_v16 = vmul.f32 0.5, %v2203_v28 }
 0x455   : > { %v2651_v35 = vadd.f32 %v2650_v34, %v2620_v56  ;;  %v2333_v17 = vmul.f32 0.5, %v2983_v41  ;;  %v2110_v44 = vpop.f32.mrf.mxu2 }
 0x456   : > { %2984 = vtanh.f32 %v2270_v16  ;;  %2252 = vmatmul.f32.gmra.mxu3 %v1837_v60 }
 0x457   : > { %v2365_v2 = vadd.f32 0.5, %v2333_v17  ;;  %v2105_v17 = vadd.f32 %v2104_v30, %v4695_v3 }
 0x459   : > { %v2397_v42 = vmul.f32 %v2365_v2, %v2200_v7  ;;  %v2205_v53 = vpop.f32.mrf.mxu3 }
 0x45a   : > { %v2206_v62 = vadd.f32 %v2205_v53, %v2093_v11 }
 0x45b   : > { %v2621_v39 = vmul.f32 %v2516_v33, %v2397_v42  ;;  %v2536_v42 = vpop.permute.xlu2 %2535 }
 0x45c   : > { %v2985_v12 = vpop.eup %2984  ;;  %v2271_v63 = vmul.f32 0.5, %v2206_v62 }
 0x45d   : > { %v2652_v4 = vadd.f32 %v2651_v35, %v2621_v39  ;;  %v2334_v5 = vmul.f32 0.5, %v2985_v12  ;;  %v2113_v33 = vpop.f32.mrf.mxu2 }
 0x45e   : > { %2986 = vtanh.f32 %v2271_v63 }
 0x45f   : > { %v2366_v45 = vadd.f32 0.5, %v2334_v5 }
 0x461   : > { %v2398_v26 = vmul.f32 %v2366_v45, %v2203_v28  ;;  %v2208_v24 = vpop.f32.mrf.mxu3  ;;  %v2531_v28 = vpop.permute.xlu1 %2530 }
 0x462   : > { %v2209_v27 = vadd.f32 %v2208_v24, %v2096_v50  ;;  %v2541_v50 = vpop.permute.xlu0 %2540 }
 0x463   : > { %v2622_v1 = vmul.f32 %v2521_v40, %v2398_v26 }
 0x464   : > { %v2987_v8 = vpop.eup %2986  ;;  %v2272_v0 = vmul.f32 0.5, %v2209_v27 }
 0x465   : > { %v2653_v38 = vadd.f32 %v2652_v4, %v2622_v1  ;;  %v2335_v52 = vmul.f32 0.5, %v2987_v8  ;;  %v2108_v4 = vadd.f32 %v2107_v46, %v4697_v19  ;;  %v2116_v40 = vpop.f32.mrf.mxu2 }
 0x466   : > { %2988 = vtanh.f32 %v2272_v0  ;;  %v2111_v0 = vadd.f32 %v2110_v44, %v4699_v25 }
 0x467   : > { %v2367_v51 = vadd.f32 0.5, %v2335_v52 }
 0x469   : > { %v2399_v7 = vmul.f32 %v2367_v51, %v2206_v62  ;;  %v2211_v32 = vpop.f32.mrf.mxu3  ;;  %v2546_v51 = vpop.permute.xlu1 %2545 }
 0x46a   : > { %v2212_v59 = vadd.f32 %v2211_v32, %v2099_v20 }
 0x46b   : > { %v2623_v61 = vmul.f32 %v2526_v58, %v2399_v7 }
 0x46c   : > { %v2989_v13 = vpop.eup %2988  ;;  %v2273_v10 = vmul.f32 0.5, %v2212_v59 }
 0x46d   : > { %v2654_v34 = vadd.f32 %v2653_v38, %v2623_v61  ;;  %v2336_v22 = vmul.f32 0.5, %v2989_v13  ;;  %v2114_v13 = vadd.f32 %v2113_v33, %v4709_v48 }
 0x46e   : > { %2990 = vtanh.f32 %v2273_v10 }
 0x46f   : > { %v2368_v55 = vadd.f32 0.5, %v2336_v22  ;;  %v2551_v22 = vpop.permute.xlu2 %2550 }
 0x471   : > { %v2400_v18 = vmul.f32 %v2368_v55, %v2209_v27  ;;  %v2214_v23 = vpop.f32.mrf.mxu3 }
 0x472   : > { %v2215_v56 = vadd.f32 %v2214_v23, %v2102_v57 }
 0x473   : > { %v2624_v60 = vmul.f32 %v2531_v28, %v2400_v18 }
 0x474   : > { %v2991_v47 = vpop.eup %2990  ;;  %v2274_v54 = vmul.f32 0.5, %v2215_v56 }
 0x475   : > { %v2655_v41 = vadd.f32 %v2654_v34, %v2624_v60  ;;  %v2337_v16 = vmul.f32 0.5, %v2991_v47 }
 0x476   : > { %2992 = vtanh.f32 %v2274_v54 }
 0x477   : > { %v2369_v35 = vadd.f32 0.5, %v2337_v16 }
 0x479   : > { %v2401_v2 = vmul.f32 %v2369_v35, %v2212_v59  ;;  %v2217_v11 = vpop.f32.mrf.mxu3  ;;  %v2119_v59 = vpop.f32.mrf.mxu2 }
 0x47a   : > { %v2218_v53 = vadd.f32 %v2217_v11, %v2105_v17  ;;  %v2556_v17 = vpop.permute.xlu0 %2555 }
 0x47b   : > { %v2625_v9 = vmul.f32 %v2536_v42, %v2401_v2  ;;  %v2120_v42 = vadd.f32 %v2119_v59, %v4716_v15 }
 0x47c   : > { %v2993_v6 = vpop.eup %2992  ;;  %v2275_v62 = vmul.f32 0.5, %v2218_v53 }
 0x47d   : > { %v2656_v39 = vadd.f32 %v2655_v41, %v2625_v9  ;;  %v2338_v12 = vmul.f32 0.5, %v2993_v6  ;;  %v2561_v9 = vpop.permute.xlu1 %2560 }
 0x47e   : > { %2994 = vtanh.f32 %v2275_v62 }
 0x47f   : > { %v2370_v63 = vadd.f32 0.5, %v2338_v12 }
 0x481   : > { %v2402_v5 = vmul.f32 %v2370_v63, %v2215_v56  ;;  %v2220_v45 = vpop.f32.mrf.mxu3  ;;  %v2117_v56 = vadd.f32 %v2116_v40, %v4714_v31  ;;  %v2122_v60 = vpop.f32.mrf.mxu2 }
 0x482   : > { %v2221_v26 = vadd.f32 %v2220_v45, %v2108_v4 }
 0x483   : > { %v2626_v24 = vmul.f32 %v2541_v50, %v2402_v5  ;;  %v2123_v50 = vadd.f32 %v2122_v60, %v4723_v37 }
 0x484   : > { %v2995_v3 = vpop.eup %2994  ;;  %v2276_v30 = vmul.f32 0.5, %v2221_v26 }
 0x485   : > { %v2657_v27 = vadd.f32 %v2656_v39, %v2626_v24  ;;  %v2339_v1 = vmul.f32 0.5, %v2995_v3  ;;  %v2566_v3 = vpop.permute.xlu2 %2565 }
 0x486   : > { %2996 = vtanh.f32 %v2276_v30 }
 0x487   : > { %v2371_v8 = vadd.f32 0.5, %v2339_v1 }
 0x489   : > { %v2403_v38 = vmul.f32 %v2371_v8, %v2218_v53  ;;  %v2223_v52 = vpop.f32.mrf.mxu3  ;;  %v2125_v62 = vpop.f32.mrf.mxu2 }
 0x48a   : > { %v2224_v20 = vadd.f32 %v2223_v52, %v2111_v0  ;;  %v2126_v52 = vadd.f32 %v2125_v62, %v4725_v21 }
 0x48b   : > { %v2627_v7 = vmul.f32 %v2546_v51, %v2403_v38 }
 0x48c   : > { %v2997_v19 = vpop.eup %2996  ;;  %v2277_v46 = vmul.f32 0.5, %v2224_v20 }
 0x48d   : > { %v2658_v32 = vadd.f32 %v2657_v27, %v2627_v7  ;;  %v2340_v58 = vmul.f32 0.5, %v2997_v19  ;;  %v2571_v7 = vpop.permute.xlu0 %2570 }
 0x48e   : > { %2998 = vtanh.f32 %v2277_v46 }
 0x48f   : > { %v2372_v61 = vadd.f32 0.5, %v2340_v58 }
 0x491   : > { %v2404_v10 = vmul.f32 %v2372_v61, %v2221_v26  ;;  %v2226_v34 = vpop.f32.mrf.mxu3  ;;  %v2128_v1 = vpop.f32.mrf.mxu2 }
 0x492   : > { %v2227_v55 = vadd.f32 %v2226_v34, %v2114_v13 }
 0x493   : > { %v2628_v57 = vmul.f32 %v2551_v22, %v2404_v10  ;;  %v2129_v10 = vadd.f32 %v2128_v1, %v4727_v14 }
 0x494   : > { %v2999_v25 = vpop.eup %2998  ;;  %v2278_v44 = vmul.f32 0.5, %v2227_v55 }
 0x495   : > { %v2659_v18 = vadd.f32 %v2658_v32, %v2628_v57  ;;  %v2341_v23 = vmul.f32 0.5, %v2999_v25 }
 0x496   : > { %3000 = vtanh.f32 %v2278_v44 }
 0x497   : > { %v2373_v28 = vadd.f32 0.5, %v2341_v23 }
 0x499   : > { %v2229_v47 = vpop.f32.mrf.mxu3  ;;  %v2405_v41 = vmul.f32 %v2373_v28, %v2224_v20  ;;  %v2131_v61 = vpop.f32.mrf.mxu2 }
 0x49a   : > { %v2230_v54 = vadd.f32 %v2229_v47, %v2117_v56  ;;  %v2132_v56 = vadd.f32 %v2131_v61, %v4734_v49 }
 0x49b   : > { %v2629_v2 = vmul.f32 %v2556_v17, %v2405_v41  ;;  %v2581_v41 = vpop.permute.xlu2 %2580 }
 0x49c   : > { %v3001_v16 = vpop.eup %3000  ;;  %v2279_v35 = vmul.f32 0.5, %v2230_v54 }
 0x49d   : > { %v2342_v48 = vmul.f32 0.5, %v3001_v16  ;;  %v2660_v39 = vadd.f32 %v2659_v18, %v2629_v2 }
 0x49e   : > { %3002 = vtanh.f32 %v2279_v35 }
 0x49f   : > { %v2374_v11 = vadd.f32 0.5, %v2342_v48 }
 0x4a1   : > { %v2406_v53 = vmul.f32 %v2374_v11, %v2227_v55  ;;  %v2232_v33 = vpop.f32.mrf.mxu3  ;;  %v2576_v55 = vpop.permute.xlu1 %2575 }
 0x4a2   : > { %v2233_v6 = vadd.f32 %v2232_v33, %v2120_v42  ;;  %v2134_v60 = vpop.f32.mrf.mxu2 }
 0x4a3   : > { %v2630_v31 = vmul.f32 %v2561_v9, %v2406_v53  ;;  %v2135_v42 = vadd.f32 %v2134_v60, %v4738_v43  ;;  %v2586_v9 = vpop.permute.xlu0 %2585 }
 0x4a4   : > { %v3003_v12 = vpop.eup %3002  ;;  %v2280_v63 = vmul.f32 0.5, %v2233_v6 }
 0x4a5   : > { %v2661_v4 = vadd.f32 %v2660_v39, %v2630_v31  ;;  %v2343_v5 = vmul.f32 0.5, %v3003_v12 }
 0x4a6   : > { %3004 = vtanh.f32 %v2280_v63 }
 0x4a7   : > { %v2375_v45 = vadd.f32 0.5, %v2343_v5 }
 0x4a9   : > { %v2407_v26 = vmul.f32 %v2375_v45, %v2230_v54  ;;  %v2235_v24 = vpop.f32.mrf.mxu3 }
 0x4aa   : > { %v2236_v30 = vadd.f32 %v2235_v24, %v2123_v50  ;;  %v2137_v62 = vpop.f32.mrf.mxu2 }
 0x4ab   : > { %v2631_v15 = vmul.f32 %v2566_v3, %v2407_v26  ;;  %v2138_v5 = vadd.f32 %v2137_v62, %v4740_v29  ;;  %v2591_v26 = vpop.permute.xlu1 %2590 }
 0x4ac   : > { %v3005_v40 = vpop.eup %3004  ;;  %v2281_v27 = vmul.f32 0.5, %v2236_v30 }
 0x4ad   : > { %v2662_v8 = vadd.f32 %v2661_v4, %v2631_v15  ;;  %v2344_v0 = vmul.f32 0.5, %v3005_v40 }
 0x4ae   : > { %3006 = vtanh.f32 %v2281_v27 }
 0x4af   : > { %v2376_v38 = vadd.f32 0.5, %v2344_v0 }
 0x4b1   : > { %v2408_v51 = vmul.f32 %v2376_v38, %v2233_v6  ;;  %v2238_v20 = vpop.f32.mrf.mxu3 }
 0x4b2   : > { %v2239_v19 = vadd.f32 %v2238_v20, %v2126_v52  ;;  %v2140_v15 = vpop.f32.mrf.mxu2  ;;  %v2596_v52 = vpop.permute.xlu2 %2595 }
 0x4b3   : > { %v2632_v46 = vmul.f32 %v2571_v7, %v2408_v51 }
 0x4b4   : > { %v3007_v37 = vpop.eup %3006  ;;  %v2282_v32 = vmul.f32 0.5, %v2239_v19 }
 0x4b5   : > { %v2663_v58 = vadd.f32 %v2662_v8, %v2632_v46  ;;  %v2345_v59 = vmul.f32 0.5, %v3007_v37  ;;  %v2141_v8 = vadd.f32 %v2140_v15, %v4747_v36 }
 0x4b6   : > { %3008 = vtanh.f32 %v2282_v32 }
 0x4b7   : > { %v2377_v13 = vadd.f32 0.5, %v2345_v59 }
 0x4b9   : > { %v2409_v34 = vmul.f32 %v2377_v13, %v2236_v30  ;;  %v2241_v22 = vpop.f32.mrf.mxu3 }
 0x4ba   : > { %v2242_v57 = vadd.f32 %v2241_v22, %v2129_v10  ;;  %v2606_v22 = vpop.permute.xlu1 %2605 }
 0x4bb   : > { %v2633_v25 = vmul.f32 %v2576_v55, %v2409_v34 }
 0x4bc   : > { %v3009_v21 = vpop.eup %3008  ;;  %v2283_v44 = vmul.f32 0.5, %v2242_v57 }
 0x4bd   : > { %v2664_v18 = vadd.f32 %v2663_v58, %v2633_v25  ;;  %v2346_v23 = vmul.f32 0.5, %v3009_v21  ;;  %v2601_v58 = vpop.permute.xlu0 %2600 }
 0x4be   : > { %3010 = vtanh.f32 %v2283_v44 }
 0x4bf   : > { %v2378_v28 = vadd.f32 0.5, %v2346_v23  ;;  %v2681_v23 = vpop.permute.xlu2 %2680 }
 0x4c1   : > { %v2410_v47 = vmul.f32 %v2378_v28, %v2239_v19  ;;  %v2244_v54 = vpop.f32.mrf.mxu3 }
 0x4c2   : > { %v2245_v16 = vadd.f32 %v2244_v54, %v2132_v56  ;;  %v2683_v56 = vperm.slane %v2681_v23, 0 }
 0x4c3   : > { %v2634_v35 = vmul.f32 %v2581_v41, %v2410_v47 }
 0x4c4   : > { %v3011_v14 = vpop.eup %3010  ;;  %v2284_v48 = vmul.f32 0.5, %v2245_v16 }
 0x4c5   : > { %v2665_v17 = vadd.f32 %v2664_v18, %v2634_v35  ;;  %v2347_v2 = vmul.f32 0.5, %v3011_v14 }
 0x4c6   : > { %3012 = vtanh.f32 %v2284_v48 }
 0x4c7   : > { %v2379_v11 = vadd.f32 0.5, %v2347_v2 }
 0x4c9   : > { %v2411_v53 = vmul.f32 %v2379_v11, %v2242_v57  ;;  %v2247_v33 = vpop.f32.mrf.mxu3 }
 0x4ca   : > { %v2248_v6 = vadd.f32 %v2247_v33, %v2135_v42 }
 0x4cb   : > { %v2635_v49 = vmul.f32 %v2586_v9, %v2411_v53 }
 0x4cc   : > { %v3013_v39 = vpop.eup %3012  ;;  %v2285_v31 = vmul.f32 0.5, %v2248_v6 }
 0x4cd   : > { %v2666_v12 = vadd.f32 %v2665_v17, %v2635_v49  ;;  %v2348_v63 = vmul.f32 0.5, %v3013_v39 }
 0x4ce   : > { %3014 = vtanh.f32 %v2285_v31 }
 0x4cf   : > { %v2380_v4 = vadd.f32 0.5, %v2348_v63 }
 0x4d1   : > { %v2412_v45 = vmul.f32 %v2380_v4, %v2245_v16  ;;  %v2250_v50 = vpop.f32.mrf.mxu3 }
 0x4d2   : > { %v2251_v24 = vadd.f32 %v2250_v50, %v2138_v5 }
 0x4d3   : > { %v2636_v3 = vmul.f32 %v2591_v26, %v2412_v45 }
 0x4d4   : > { %v3015_v43 = vpop.eup %3014  ;;  %v2286_v30 = vmul.f32 0.5, %v2251_v24 }
 0x4d5   : > { %v2667_v40 = vadd.f32 %v2666_v12, %v2636_v3  ;;  %v2349_v27 = vmul.f32 0.5, %v3015_v43 }
 0x4d6   : > { %3016 = vtanh.f32 %v2286_v30 }
 0x4d7   : > { %v2381_v1 = vadd.f32 0.5, %v2349_v27 }
 0x4d9   : > { %v2413_v0 = vmul.f32 %v2381_v1, %v2248_v6  ;;  %v2253_v38 = vpop.f32.mrf.mxu3 }
 0x4da   : > { %v2254_v51 = vadd.f32 %v2253_v38, %v2141_v8 }
 0x4db   : > { %v2637_v20 = vmul.f32 %v2596_v52, %v2413_v0 }
 0x4dc   : > { %v3017_v29 = vpop.eup %3016  ;;  %v2287_v7 = vmul.f32 0.5, %v2254_v51 }
 0x4dd   : > { %v2668_v19 = vadd.f32 %v2667_v40, %v2637_v20  ;;  %v2350_v46 = vmul.f32 0.5, %v3017_v29 }
 0x4de   : > { %3018 = vtanh.f32 %v2287_v7 }
 0x4df   : > { %v2382_v37 = vadd.f32 0.5, %v2350_v46 }
 0x4e1   : > { %v2414_v32 = vmul.f32 %v2382_v37, %v2251_v24 }
 0x4e3   : > { %v2638_v59 = vmul.f32 %v2601_v58, %v2414_v32 }
 0x4e4   : > { %v3019_v61 = vpop.eup %3018 }
 0x4e5   : > { %v2669_v13 = vadd.f32 %v2668_v19, %v2638_v59  ;;  %v2351_v10 = vmul.f32 0.5, %v3019_v61 }
 0x4e7   : > { %v2383_v36 = vadd.f32 0.5, %v2351_v10 }
 0x4e9   : > { %v2415_v34 = vmul.f32 %v2383_v36, %v2254_v51 }
 0x4eb   : > { %v2639_v55 = vmul.f32 %v2606_v22, %v2415_v34 }
 0x4ed   : > { %v2670_v57 = vadd.f32 %v2669_v13, %v2639_v55 }
 0x4ef   : > { %v2671_v25 = vrot.slane %v2670_v57, 4 }
 0x4f1   : > { %v2672_v21 = vadd.f32 %v2671_v25, %v2670_v57 }
 0x4f3   : > { %v2673_v44 = vrot.slane %v2672_v21, 2 }
 0x4f5   : > { %v2674_v18 = vadd.f32 %v2673_v44, %v2672_v21 }
 0x4f7   : > { %v2675_v28 = vrot.slane %v2674_v18, 1 }
 0x4f9   : > { %v2676_v60 = vadd.f32 %v2675_v28, %v2674_v18 }
 0x4fb   : > { %v2684_v47 = vadd.f32 %v2683_v56, %v2676_v60 }
 0x4fd   : > { %2685 = vst [vmem:[%s324_s22] sm:$0x1] %v2684_v47 }
 0x4fe   : > { %3047 = shalt.err (!%p3044_p3)
}
 0x4ff   : > { %2761 = dma.vmem_to_hbm [thread:$0]  (%p3177_p5), %s2698_s23, 16, %s2700_s24, %s2687_s25  }
 0x500 PF: > { %p2767_p4 = scmp.ge.s32.totalorder %s3082_s14, 2  ;;  %s2711_s10 = sand.u32 1, %s3070_s11  }
 0x501   : > { %s2712_s17 = scalar_lea.sflag [#allocation4], %s2711_s10 }
 0x502   : > { %p2764_p7 = pnand %p2767_p4, %p3181_p6 }
 0x504   : > { %p2765_p8 = pneg %p2764_p7 }
 0x506   : > { %3065 = dma.done.wait (%p2765_p8), %s2712_s17, 16  }
 0x507   : > { %3067 = vsyncadd (%p2765_p8), %s2712_s17, 4294967280  ;;  %p21_p9 = scmp.ge.s32.totalorder %s3164_s16, 6   ;;  %s4898_s11 = smov %s3074_s12 }
 0x508   : > { %s4899_s12 = smov %s3078_s13  ;;  %s4900_s13 = smov %s3175_s19 }
 0x509   : > { %s4901_s14 = smov %s3164_s16  ;;  %23 = sbr.rel (!%p21_p9) target bundleno = 6 (0x6), region = 91 }
 0x50e   :  { %2717 = vsyncpa [#allocation4], 1 }
 0x50f   :  { %2719 = vsyncpa [#allocation4 + $0x1], 1 }

</bundles_post_ra>
